<compile_context>
chip_gen: v7x
topology: tpu7x:2x2x1
jax: 0.10.0
libtpu: 0.0.40
codegen_flags: <defaults>
</compile_context>

<pallas_src>
import functools
import math
import numpy as np
import jax
import jax.numpy as jnp
from jax.experimental import pallas as pl
from jax.experimental.pallas import tpu as pltpu


def _round_up(x, m):
    return (x + m - 1) // m * m


def _num_tensorcores():
    """Best-effort TensorCores-per-chip query (2 on v7x-style parts, else 1)."""
    try:
        info = pltpu.get_tpu_info()
    except Exception:
        return 1
    for name in ("num_cores", "cores_per_chip", "tensorcores_per_chip",
                 "num_tensorcores", "core_count"):
        v = getattr(info, name, None)
        if isinstance(v, int) and v >= 1:
            return min(v, 2)
    return 1


# -----------------------------------------------------------------------------
# Pallas kernel: one GRU layer, TB timesteps per grid step, fused input proj.
# -----------------------------------------------------------------------------
def _gru_chunk_kernel(x_ref, mask_ref, wih_ref, bgi_ref, whh_rz_ref, whh_n_ref,
                      bhn_ref, out_ref, hlast_ref, gi_scr, *, unroll):
    """grid=(batch_blocks, Tp // TB): batch axis parallel, time axis sequential.

    x_ref      : (TB, Bb, Hp)        layer input chunk
    mask_ref   : (TB, Bb, 1)   f32   1.0 where t < seq_len else 0.0
    wih_ref    : (Hp, 3Hp)           input weights, gate order r|z|n (resident)
    bgi_ref    : (1, 3Hp)      f32   b_ih with b_hh's r/z columns folded in
    whh_rz_ref : (Hp, 2Hp)           recurrent weights, r|z columns (resident)
    whh_n_ref  : (Hp, Hp)            recurrent weights, n column (resident)
    bhn_ref    : (1, Hp)       f32   hidden bias of the n gate only
    out_ref    : (TB, Bb, Hp)        layer output chunk (lane-dense)
    hlast_ref  : (Bb, Hp)      f32   resident block; doubles as the recurrent
                                     state carried across time chunks
    gi_scr     : (TB, Bb, 3Hp) f32   chunk input projection (VMEM scratch)
    """
    tb, bb, hp = out_ref.shape

    @pl.when(pl.program_id(1) == 0)
    def _():
        hlast_ref[...] = jnp.zeros_like(hlast_ref)

    # ---- off the serial path: input projection for the whole chunk ---------
    # (TB*Bb, Hp) @ (Hp, 3Hp): the reshape is tile-aligned (Bb%8, Hp%128) so it
    # is a free view, and M=TB*Bb actually fills the MXU rows.
    x_flat = x_ref[...].reshape(tb * bb, hp)
    gi = jnp.dot(x_flat.astype(wih_ref.dtype), wih_ref[...],
                 preferred_element_type=jnp.float32)
    gi = gi + bgi_ref[...].astype(jnp.float32)          # one broadcast per chunk
    gi_scr[...] = gi.reshape(tb, bb, 3 * hp)

    # ---- loop invariants hoisted (JAX does not CSE broadcast_in_dim) -------
    bhn_b = jnp.broadcast_to(bhn_ref[...].astype(jnp.float32), (bb, hp))
    whh_rz = whh_rz_ref[...]
    whh_n = whh_n_ref[...]

    def step(s, h):
        gi_s = gi_scr[s]                                  # (Bb, 3Hp) f32
        hm = h.astype(whh_rz.dtype)
        # split matmul: rz columns can start feeding the EUP sigmoids while the
        # n columns are still draining from the MXU.
        gh_rz = jnp.dot(hm, whh_rz, preferred_element_type=jnp.float32)
        gh_n = jnp.dot(hm, whh_n, preferred_element_type=jnp.float32)
        rz = jax.nn.sigmoid(gi_s[:, :2 * hp] + gh_rz)     # fused (Bb,2Hp) sigmoid
        r = rz[:, :hp]
        z = rz[:, hp:]
        n = jnp.tanh(gi_s[:, 2 * hp:] + r * (gh_n + bhn_b))
        h_new = (1.0 - z) * n + z * h
        m = jnp.broadcast_to(mask_ref[s].astype(jnp.float32), (bb, hp))
        out_ref[s] = (m * h_new).astype(out_ref.dtype)    # padded out = 0
        return h + m * (h_new - h)                        # freeze state past end

    hlast_ref[...] = jax.lax.fori_loop(0, tb, step, hlast_ref[...],
                                       unroll=unroll)


def _gru_layer(x, mask, w_ih, b_gi, w_hh_rz, w_hh_n, b_hn, *,
               time_block, batch_blocks, unroll):
    """x: (Tp, Bp, Hp) f32; mask: (Tp, Bp, 1) f32; returns (out, h_last)."""
    Tp, Bp, Hp = x.shape
    nb = batch_blocks
    Bb = Bp // nb
    nc = Tp // time_block
    f32 = 4
    wbytes = jnp.dtype(w_ih.dtype).itemsize

    # Explicit VMEM budget with headroom (review item): x/out double-buffered,
    # weights single-buffered, gi scratch single, mask lane-padded to 128.
    est = (2 * time_block * Bb * Hp * f32              # x blocks
           + 2 * time_block * Bb * 128 * f32           # mask blocks (lane pad)
           + 6 * Hp * Hp * wbytes + 4 * Hp * f32       # resident weights/biases
           + 2 * time_block * Bb * Hp * f32            # out blocks
           + 2 * Bb * Hp * f32                         # hlast
           + time_block * Bb * 3 * Hp * f32)           # gi scratch
    vmem_limit = max(32 * 1024 * 1024, int(est * 1.4))

    resident = dict(pipeline_mode=pl.Buffered(1))      # constant-index weights:
    kernel = functools.partial(_gru_chunk_kernel, unroll=unroll)

    out, h_last = pl.pallas_call(
        kernel,
        out_shape=(jax.ShapeDtypeStruct((Tp, Bp, Hp), jnp.float32),
                   jax.ShapeDtypeStruct((Bp, Hp), jnp.float32)),
        grid_spec=pltpu.PrefetchScalarGridSpec(
            num_scalar_prefetch=0,
            grid=(nb, nc),
            in_specs=[
                pl.BlockSpec((time_block, Bb, Hp), lambda b, c: (c, b, 0)),
                pl.BlockSpec((time_block, Bb, 1), lambda b, c: (c, b, 0)),
                pl.BlockSpec((Hp, 3 * Hp), lambda b, c: (0, 0), **resident),
                pl.BlockSpec((1, 3 * Hp), lambda b, c: (0, 0), **resident),
                pl.BlockSpec((Hp, 2 * Hp), lambda b, c: (0, 0), **resident),
                pl.BlockSpec((Hp, Hp), lambda b, c: (0, 0), **resident),
                pl.BlockSpec((1, Hp), lambda b, c: (0, 0), **resident),
            ],
            out_specs=[
                pl.BlockSpec((time_block, Bb, Hp), lambda b, c: (c, b, 0)),
                pl.BlockSpec((Bb, Hp), lambda b, c: (b, 0)),
            ],
            scratch_shapes=[pltpu.VMEM((time_block, Bb, 3 * Hp), jnp.float32)],
        ),
        compiler_params=pltpu.CompilerParams(
            # batch blocks are independent (megacore on v7x); the time axis
            # carries the recurrent state -> must stay sequential.
            dimension_semantics=("parallel", "arbitrary"),
            vmem_limit_bytes=vmem_limit),
    )(x, mask, w_ih, b_gi, w_hh_rz, w_hh_n, b_hn)
    return out, h_last


# -----------------------------------------------------------------------------
# Parameters (PyTorch-style init, stored transposed: (in_dim, 3H), order r|z|n)
# -----------------------------------------------------------------------------
def init_gru_params(key, n_dim, n_layers):
    k = 1.0 / math.sqrt(n_dim)
    params = []
    for _ in range(n_layers):
        key, k1, k2, k3, k4 = jax.random.split(key, 5)
        w_ih = jax.random.uniform(k1, (n_dim, 3 * n_dim), jnp.float32, -k, k)
        w_hh = jax.random.uniform(k2, (n_dim, 3 * n_dim), jnp.float32, -k, k)
        b_ih = jax.random.uniform(k3, (1, 3 * n_dim), jnp.float32, -k, k)
        b_hh = jax.random.uniform(k4, (1, 3 * n_dim), jnp.float32, -k, k)
        params.append((w_ih, w_hh, b_ih, b_hh))
    return params


def _pad_gate_cols(a, H, Hp):
    """(..., 3H) -> (..., 3Hp): each r|z|n gate block zero-padded to Hp cols."""
    pad = [(0, 0)] * (a.ndim - 1) + [(0, Hp - H)]
    return jnp.concatenate(
        [jnp.pad(a[..., g * H:(g + 1) * H], pad) for g in range(3)], axis=-1)


# -----------------------------------------------------------------------------
# Forward pass mirroring GRUEncoder.forward (eval mode)
# -----------------------------------------------------------------------------
def gru_encoder_forward(params, seq_emb, seq_len, idx_unsort=None,
                        drop_emb=False, *, time_block=16,
                        matmul_dtype=jnp.bfloat16, batch_blocks=None):
    """seq_emb: (B, T, H) f32 batch-first (T == max(seq_len)); seq_len: (B,) int.

    Returns (output (B, T, H), h_last (B, n_layers, H)).
    matmul_dtype: MXU operand dtype (bf16 default — MXU-native on v5e/v6e/v7x;
    gates and the recurrent state stay f32).  Use jnp.float32 for very long
    sequences if recurrent bf16 drift matters.
    """
    del idx_unsort          # the original PyTorch forward never uses it either
    del drop_emb            # TODO(synk): training-mode embedding dropout
    B, T, H = seq_emb.shape
    Bp = _round_up(max(B, 8), 8)            # sublane-aligned batch
    Hp = _round_up(max(H, 128), 128)        # lane-dense hidden
    TB = max(1, min(time_block, T))         # clamp: no dead steps on short T
    Tp = _round_up(T, TB)

    if batch_blocks is None:                # use both TCs on v7x when possible
        batch_blocks = 2 if _num_tensorcores() >= 2 else 1
    if batch_blocks < 1 or Bp % (8 * batch_blocks) != 0:
        batch_blocks = 1

    unroll = True if Hp <= 256 else min(8, TB)   # avoid spills at large Hp

    # time-major, padded to hardware tiles (zero padding is exact for the GRU)
    x = jnp.transpose(seq_emb.astype(jnp.float32), (1, 0, 2))   # (T, B, H)
    x = jnp.pad(x, ((0, Tp - T), (0, Bp - B), (0, Hp - H)))     # (Tp, Bp, Hp)

    lens = jnp.pad(jnp.asarray(seq_len, jnp.int32), (0, Bp - B))  # pad rows -> 0
    mask = (jnp.arange(Tp, dtype=jnp.int32)[:, None] < lens[None, :])
    mask = mask.astype(jnp.float32)[:, :, None]                 # (Tp, Bp, 1)

    h_lasts = []
    for (w_ih, w_hh, b_ih, b_hh) in params:
        w_ih_p = jnp.pad(_pad_gate_cols(w_ih, H, Hp), ((0, Hp - H), (0, 0)))
        w_hh_p = jnp.pad(_pad_gate_cols(w_hh, H, Hp), ((0, Hp - H), (0, 0)))
        b_ih_p = _pad_gate_cols(b_ih, H, Hp)                    # (1, 3Hp)
        b_hh_p = _pad_gate_cols(b_hh, H, Hp)                    # (1, 3Hp)
        # fold b_hh's r/z columns into the fused-input-projection bias; the
        # n-gate hidden bias must stay inside r * (W_hn h + b_hn).
        b_gi = (b_ih_p.at[:, :2 * Hp].add(b_hh_p[:, :2 * Hp])).astype(jnp.float32)
        b_hn = b_hh_p[:, 2 * Hp:].astype(jnp.float32)           # (1, Hp)

        x, h_last = _gru_layer(
            x, mask,
            w_ih_p.astype(matmul_dtype), b_gi,
            w_hh_p[:, :2 * Hp].astype(matmul_dtype),
            w_hh_p[:, 2 * Hp:].astype(matmul_dtype),
            b_hn,
            time_block=TB, batch_blocks=batch_blocks, unroll=unroll)
        h_lasts.append(h_last[:B, :H])

    output = jnp.transpose(x[:T, :B, :H], (1, 0, 2))            # (B, T, H)
    h_last = jnp.stack(h_lasts, axis=1)                         # (B, L, H)
    return output, h_last


# -----------------------------------------------------------------------------
# Pure-JAX reference (lax.scan) for correctness checking
# -----------------------------------------------------------------------------
def gru_encoder_reference(params, seq_emb, seq_len):
    B, T, H = seq_emb.shape
    x = seq_emb.astype(jnp.float32)
    seq_len = seq_len.astype(jnp.int32)
    h_lasts = []
    for (w_ih, w_hh, b_ih, b_hh) in params:
        def step(h, inp):
            xt, t = inp
            gi = xt @ w_ih + b_ih
            gh = h @ w_hh + b_hh
            r = jax.nn.sigmoid(gi[:, :H] + gh[:, :H])
            z = jax.nn.sigmoid(gi[:, H:2 * H] + gh[:, H:2 * H])
            n = jnp.tanh(gi[:, 2 * H:] + r * gh[:, 2 * H:])
            hn = (1.0 - z) * n + z * h
            valid = (seq_len > t)[:, None]
            return jnp.where(valid, hn, h), jnp.where(valid, hn, 0.0)
        h0 = jnp.zeros((B, H), jnp.float32)
        hT, outs = jax.lax.scan(step, h0,
                                (jnp.transpose(x, (1, 0, 2)), jnp.arange(T)))
        x = jnp.transpose(outs, (1, 0, 2))
        h_lasts.append(hT)
    return x, jnp.stack(h_lasts, axis=1)


if __name__ == "__main__":
    B, T, H = 4, 9, 32          # batch, seq len, hidden (n_dim)
    N_LAYERS = 2

    key = jax.random.PRNGKey(0)
    key, kp, kx = jax.random.split(key, 3)

    params = init_gru_params(kp, H, N_LAYERS)
    seq_emb = jax.random.normal(kx, (B, T, H), jnp.float32)
    seq_len = jnp.array([9, 5, 3, 7], jnp.int32)   # max == T (pad_packed semantics)
    idx_unsort = jnp.arange(B)                      # unused, signature parity

    ref_out, ref_h = gru_encoder_reference(params, seq_emb, seq_len)

    # f32 MXU operands: tight numerical check of the fused kernel path.
    out_f32, h_f32 = gru_encoder_forward(params, seq_emb, seq_len, idx_unsort,
                                         drop_emb=False,
                                         matmul_dtype=jnp.float32)
    out_f32 = jax.block_until_ready(out_f32)
    h_f32 = jax.block_until_ready(h_f32)
    np.testing.assert_allclose(np.asarray(out_f32), np.asarray(ref_out),
                               rtol=1e-3, atol=1e-3)
    np.testing.assert_allclose(np.asarray(h_f32), np.asarray(ref_h),
                               rtol=1e-3, atol=1e-3)
    assert out_f32.shape == (B, T, H)
    assert h_f32.shape == (B, N_LAYERS, H)

    # Default path: bf16 MXU operands, f32 gates/state.  (For very long T,
    # validate recurrent bf16 drift or fall back to matmul_dtype=f32.)
    out_bf, h_bf = gru_encoder_forward(params, seq_emb, seq_len, idx_unsort,
                                       drop_emb=False)
    out_bf = jax.block_until_ready(out_bf)
    h_bf = jax.block_until_ready(h_bf)
    np.testing.assert_allclose(np.asarray(out_bf), np.asarray(ref_out),
                               rtol=1e-1, atol=1e-1)
    np.testing.assert_allclose(np.asarray(h_bf), np.asarray(ref_h),
                               rtol=1e-1, atol=1e-1)

    print("KERNEL_OK")
</pallas_src>

<mosaic_0001>
module attributes {stable_mosaic.version = 11 : i64} {
  func.func @_gru_chunk_kernel(%arg0: i32, %arg1: i32, %arg2: memref<9x8x128xf32, #tpu.memory_space<vmem>>, %arg3: memref<9x8x1xf32, #tpu.memory_space<vmem>>, %arg4: memref<128x384xf32, #tpu.memory_space<vmem>>, %arg5: memref<1x384xf32, #tpu.memory_space<vmem>>, %arg6: memref<128x256xf32, #tpu.memory_space<vmem>>, %arg7: memref<128x128xf32, #tpu.memory_space<vmem>>, %arg8: memref<1x128xf32, #tpu.memory_space<vmem>>, %arg9: memref<9x8x128xf32, #tpu.memory_space<vmem>>, %arg10: memref<8x128xf32, #tpu.memory_space<vmem>>, %arg11: memref<9x8x384xf32, #tpu.memory_space<vmem>>) attributes {dimension_semantics = [#tpu.dimension_semantics<parallel>, #tpu.dimension_semantics<arbitrary>], iteration_bounds = array<i64: 1, 1>, scalar_prefetch = 0 : i64, scratch_operands = 1 : i64, tpu.core_type = #tpu.core_type<tc>, window_params = [{transform_indices = @transform_0, window_bounds = array<i64: 9, 8, 128>}, {transform_indices = @transform_1, window_bounds = array<i64: 9, 8, 1>}, {pipeline_mode = #tpu.pipeline_mode<synchronous>, transform_indices = @transform_2, window_bounds = array<i64: 128, 384>}, {pipeline_mode = #tpu.pipeline_mode<synchronous>, transform_indices = @transform_3, window_bounds = array<i64: 1, 384>}, {pipeline_mode = #tpu.pipeline_mode<synchronous>, transform_indices = @transform_4, window_bounds = array<i64: 128, 256>}, {pipeline_mode = #tpu.pipeline_mode<synchronous>, transform_indices = @transform_5, window_bounds = array<i64: 128, 128>}, {pipeline_mode = #tpu.pipeline_mode<synchronous>, transform_indices = @transform_6, window_bounds = array<i64: 1, 128>}, {transform_indices = @transform_7, window_bounds = array<i64: 9, 8, 128>}, {transform_indices = @transform_8, window_bounds = array<i64: 8, 128>}]} {
    %c0_i32 = arith.constant 0 : i32
    %0 = arith.cmpi eq, %arg1, %c0_i32 : i32
    %1 = arith.extui %0 : i1 to i32
    %c0_i32_0 = arith.constant 0 : i32
    %2 = arith.cmpi ne, %1, %c0_i32_0 : i32
    scf.if %2 {
      %cst_111 = arith.constant 0.000000e+00 : f32
      %352 = vector.broadcast %cst_111 : f32 to vector<8x128xf32>
      %c0_112 = arith.constant 0 : index
      %c0_113 = arith.constant 0 : index
      %353 = vector.load %arg10[%c0_112, %c0_113] : memref<8x128xf32, #tpu.memory_space<vmem>>, vector<8x128xf32>
      tpu.vector_store %arg10[%c0_112, %c0_113], %352 {strides = array<i32>} : memref<8x128xf32, #tpu.memory_space<vmem>>, vector<8x128xf32>,
    } else {
    }
    %c0 = arith.constant 0 : index
    %c0_1 = arith.constant 0 : index
    %c0_2 = arith.constant 0 : index
    %3 = vector.load %arg2[%c0, %c0_1, %c0_2] : memref<9x8x128xf32, #tpu.memory_space<vmem>>, vector<9x8x128xf32>
    %4 = vector.shape_cast %3 : vector<9x8x128xf32> to vector<72x128xf32>
    %c0_3 = arith.constant 0 : index
    %c0_4 = arith.constant 0 : index
    %5 = vector.load %arg4[%c0_3, %c0_4] : memref<128x384xf32, #tpu.memory_space<vmem>>, vector<128x384xf32>
    %cst = arith.constant dense<0.000000e+00> : vector<72x384xf32>
    %6 = tpu.matmul %4, %5, %cst {dimension_numbers = #tpu.dot_dimension_numbers<[1], [0], [0], [1], [0, 0, 1, 1], [], []>} : vector<72x128xf32>, vector<128x384xf32>, vector<72x384xf32> -> vector<72x384xf32>
    %c0_5 = arith.constant 0 : index
    %c0_6 = arith.constant 0 : index
    %7 = vector.load %arg5[%c0_5, %c0_6] : memref<1x384xf32, #tpu.memory_space<vmem>>, vector<1x384xf32>
    %8 = vector.broadcast %7 : vector<1x384xf32> to vector<72x384xf32>
    %9 = arith.addf %6, %8 : vector<72x384xf32>
    %10 = vector.shape_cast %9 : vector<72x384xf32> to vector<9x8x384xf32>
    %c0_7 = arith.constant 0 : index
    %c0_8 = arith.constant 0 : index
    %c0_9 = arith.constant 0 : index
    %11 = vector.load %arg11[%c0_7, %c0_8, %c0_9] : memref<9x8x384xf32, #tpu.memory_space<vmem>>, vector<9x8x384xf32>
    tpu.vector_store %arg11[%c0_7, %c0_8, %c0_9], %10 {strides = array<i32>} : memref<9x8x384xf32, #tpu.memory_space<vmem>>, vector<9x8x384xf32>,
    %c0_10 = arith.constant 0 : index
    %c0_11 = arith.constant 0 : index
    %12 = vector.load %arg8[%c0_10, %c0_11] : memref<1x128xf32, #tpu.memory_space<vmem>>, vector<1x128xf32>
    %13 = vector.shape_cast %12 : vector<1x128xf32> to vector<1x128xf32>
    %14 = vector.broadcast %13 : vector<1x128xf32> to vector<8x128xf32>
    %c0_12 = arith.constant 0 : index
    %c0_13 = arith.constant 0 : index
    %15 = vector.load %arg6[%c0_12, %c0_13] : memref<128x256xf32, #tpu.memory_space<vmem>>, vector<128x256xf32>
    %c0_14 = arith.constant 0 : index
    %c0_15 = arith.constant 0 : index
    %16 = vector.load %arg7[%c0_14, %c0_15] : memref<128x128xf32, #tpu.memory_space<vmem>>, vector<128x128xf32>
    %c0_16 = arith.constant 0 : index
    %c0_17 = arith.constant 0 : index
    %17 = vector.load %arg10[%c0_16, %c0_17] : memref<8x128xf32, #tpu.memory_space<vmem>>, vector<8x128xf32>
    %c0_i32_18 = arith.constant 0 : i32
    %18 = arith.index_cast %c0_i32_18 : i32 to index
    %c0_19 = arith.constant 0 : index
    %c0_20 = arith.constant 0 : index
    %19 = vector.load %arg11[%18, %c0_19, %c0_20] : memref<9x8x384xf32, #tpu.memory_space<vmem>>, vector<1x8x384xf32>
    %20 = vector.shape_cast %19 : vector<1x8x384xf32> to vector<8x384xf32>
    %cst_21 = arith.constant dense<0.000000e+00> : vector<8x256xf32>
    %21 = tpu.matmul %17, %15, %cst_21 {dimension_numbers = #tpu.dot_dimension_numbers<[1], [0], [0], [1], [0, 0, 1, 1], [], []>} : vector<8x128xf32>, vector<128x256xf32>, vector<8x256xf32> -> vector<8x256xf32>
    %cst_22 = arith.constant dense<0.000000e+00> : vector<8x128xf32>
    %22 = tpu.matmul %17, %16, %cst_22 {dimension_numbers = #tpu.dot_dimension_numbers<[1], [0], [0], [1], [0, 0, 1, 1], [], []>} : vector<8x128xf32>, vector<128x128xf32>, vector<8x128xf32> -> vector<8x128xf32>
    %23 = vector.extract_strided_slice %20 {offsets = [0, 0], sizes = [8, 256], strides = [1, 1]} : vector<8x384xf32> to vector<8x256xf32>
    %24 = arith.addf %23, %21 : vector<8x256xf32>
    %25 = arith.negf %24 : vector<8x256xf32>
    %26 = math.exp %25 : vector<8x256xf32>
    %cst_23 = arith.constant 1.000000e+00 : f32
    %27 = vector.broadcast %cst_23 : f32 to vector<8x256xf32>
    %28 = arith.addf %27, %26 : vector<8x256xf32>
    %29 = arith.divf %27, %28 : vector<8x256xf32>
    %30 = vector.extract_strided_slice %29 {offsets = [0, 0], sizes = [8, 128], strides = [1, 1]} : vector<8x256xf32> to vector<8x128xf32>
    %31 = vector.extract_strided_slice %29 {offsets = [0, 128], sizes = [8, 128], strides = [1, 1]} : vector<8x256xf32> to vector<8x128xf32>
    %32 = vector.extract_strided_slice %20 {offsets = [0, 256], sizes = [8, 128], strides = [1, 1]} : vector<8x384xf32> to vector<8x128xf32>
    %33 = arith.addf %22, %14 : vector<8x128xf32>
    %34 = arith.mulf %30, %33 : vector<8x128xf32>
    %35 = arith.addf %32, %34 : vector<8x128xf32>
    %36 = math.tanh %35 : vector<8x128xf32>
    %cst_24 = arith.constant 1.000000e+00 : f32
    %37 = vector.broadcast %cst_24 : f32 to vector<8x128xf32>
    %38 = arith.subf %37, %31 : vector<8x128xf32>
    %39 = arith.mulf %38, %36 : vector<8x128xf32>
    %40 = arith.mulf %31, %17 : vector<8x128xf32>
    %41 = arith.addf %39, %40 : vector<8x128xf32>
    %42 = arith.index_cast %c0_i32_18 : i32 to index
    %c0_25 = arith.constant 0 : index
    %c0_26 = arith.constant 0 : index
    %43 = vector.load %arg3[%42, %c0_25, %c0_26] : memref<9x8x1xf32, #tpu.memory_space<vmem>>, vector<1x8x1xf32>
    %44 = vector.shape_cast %43 : vector<1x8x1xf32> to vector<8x1xf32>
    %45 = vector.shape_cast %44 : vector<8x1xf32> to vector<8x1xf32>
    %46 = vector.broadcast %45 : vector<8x1xf32> to vector<8x128xf32>
    %47 = arith.mulf %46, %41 : vector<8x128xf32>
    %48 = arith.index_cast %c0_i32_18 : i32 to index
    %c0_27 = arith.constant 0 : index
    %c0_28 = arith.constant 0 : index
    %49 = vector.load %arg9[%48, %c0_27, %c0_28] : memref<9x8x128xf32, #tpu.memory_space<vmem>>, vector<1x8x128xf32>
    %50 = vector.shape_cast %49 : vector<1x8x128xf32> to vector<8x128xf32>
    %51 = vector.shape_cast %47 : vector<8x128xf32> to vector<1x8x128xf32>
    tpu.vector_store %arg9[%48, %c0_27, %c0_28], %51 {strides = array<i32>} : memref<9x8x128xf32, #tpu.memory_space<vmem>>, vector<1x8x128xf32>,
    %52 = arith.subf %41, %17 : vector<8x128xf32>
    %53 = arith.mulf %46, %52 : vector<8x128xf32>
    %54 = arith.addf %17, %53 : vector<8x128xf32>
    %c1_i32 = arith.constant 1 : i32
    %55 = arith.index_cast %c1_i32 : i32 to index
    %c0_29 = arith.constant 0 : index
    %c0_30 = arith.constant 0 : index
    %56 = vector.load %arg11[%55, %c0_29, %c0_30] : memref<9x8x384xf32, #tpu.memory_space<vmem>>, vector<1x8x384xf32>
    %57 = vector.shape_cast %56 : vector<1x8x384xf32> to vector<8x384xf32>
    %cst_31 = arith.constant dense<0.000000e+00> : vector<8x256xf32>
    %58 = tpu.matmul %54, %15, %cst_31 {dimension_numbers = #tpu.dot_dimension_numbers<[1], [0], [0], [1], [0, 0, 1, 1], [], []>} : vector<8x128xf32>, vector<128x256xf32>, vector<8x256xf32> -> vector<8x256xf32>
    %cst_32 = arith.constant dense<0.000000e+00> : vector<8x128xf32>
    %59 = tpu.matmul %54, %16, %cst_32 {dimension_numbers = #tpu.dot_dimension_numbers<[1], [0], [0], [1], [0, 0, 1, 1], [], []>} : vector<8x128xf32>, vector<128x128xf32>, vector<8x128xf32> -> vector<8x128xf32>
    %60 = vector.extract_strided_slice %57 {offsets = [0, 0], sizes = [8, 256], strides = [1, 1]} : vector<8x384xf32> to vector<8x256xf32>
    %61 = arith.addf %60, %58 : vector<8x256xf32>
    %62 = arith.negf %61 : vector<8x256xf32>
    %63 = math.exp %62 : vector<8x256xf32>
    %cst_33 = arith.constant 1.000000e+00 : f32
    %64 = vector.broadcast %cst_33 : f32 to vector<8x256xf32>
    %65 = arith.addf %64, %63 : vector<8x256xf32>
    %66 = arith.divf %64, %65 : vector<8x256xf32>
    %67 = vector.extract_strided_slice %66 {offsets = [0, 0], sizes = [8, 128], strides = [1, 1]} : vector<8x256xf32> to vector<8x128xf32>
    %68 = vector.extract_strided_slice %66 {offsets = [0, 128], sizes = [8, 128], strides = [1, 1]} : vector<8x256xf32> to vector<8x128xf32>
    %69 = vector.extract_strided_slice %57 {offsets = [0, 256], sizes = [8, 128], strides = [1, 1]} : vector<8x384xf32> to vector<8x128xf32>
    %70 = arith.addf %59, %14 : vector<8x128xf32>
    %71 = arith.mulf %67, %70 : vector<8x128xf32>
    %72 = arith.addf %69, %71 : vector<8x128xf32>
    %73 = math.tanh %72 : vector<8x128xf32>
    %cst_34 = arith.constant 1.000000e+00 : f32
    %74 = vector.broadcast %cst_34 : f32 to vector<8x128xf32>
    %75 = arith.subf %74, %68 : vector<8x128xf32>
    %76 = arith.mulf %75, %73 : vector<8x128xf32>
    %77 = arith.mulf %68, %54 : vector<8x128xf32>
    %78 = arith.addf %76, %77 : vector<8x128xf32>
    %79 = arith.index_cast %c1_i32 : i32 to index
    %c0_35 = arith.constant 0 : index
    %c0_36 = arith.constant 0 : index
    %80 = vector.load %arg3[%79, %c0_35, %c0_36] : memref<9x8x1xf32, #tpu.memory_space<vmem>>, vector<1x8x1xf32>
    %81 = vector.shape_cast %80 : vector<1x8x1xf32> to vector<8x1xf32>
    %82 = vector.shape_cast %81 : vector<8x1xf32> to vector<8x1xf32>
    %83 = vector.broadcast %82 : vector<8x1xf32> to vector<8x128xf32>
    %84 = arith.mulf %83, %78 : vector<8x128xf32>
    %85 = arith.index_cast %c1_i32 : i32 to index
    %c0_37 = arith.constant 0 : index
    %c0_38 = arith.constant 0 : index
    %86 = vector.load %arg9[%85, %c0_37, %c0_38] : memref<9x8x128xf32, #tpu.memory_space<vmem>>, vector<1x8x128xf32>
    %87 = vector.shape_cast %86 : vector<1x8x128xf32> to vector<8x128xf32>
    %88 = vector.shape_cast %84 : vector<8x128xf32> to vector<1x8x128xf32>
    tpu.vector_store %arg9[%85, %c0_37, %c0_38], %88 {strides = array<i32>} : memref<9x8x128xf32, #tpu.memory_space<vmem>>, vector<1x8x128xf32>,
    %89 = arith.subf %78, %54 : vector<8x128xf32>
    %90 = arith.mulf %83, %89 : vector<8x128xf32>
    %91 = arith.addf %54, %90 : vector<8x128xf32>
    %c2_i32 = arith.constant 2 : i32
    %92 = arith.index_cast %c2_i32 : i32 to index
    %c0_39 = arith.constant 0 : index
    %c0_40 = arith.constant 0 : index
    %93 = vector.load %arg11[%92, %c0_39, %c0_40] : memref<9x8x384xf32, #tpu.memory_space<vmem>>, vector<1x8x384xf32>
    %94 = vector.shape_cast %93 : vector<1x8x384xf32> to vector<8x384xf32>
    %cst_41 = arith.constant dense<0.000000e+00> : vector<8x256xf32>
    %95 = tpu.matmul %91, %15, %cst_41 {dimension_numbers = #tpu.dot_dimension_numbers<[1], [0], [0], [1], [0, 0, 1, 1], [], []>} : vector<8x128xf32>, vector<128x256xf32>, vector<8x256xf32> -> vector<8x256xf32>
    %cst_42 = arith.constant dense<0.000000e+00> : vector<8x128xf32>
    %96 = tpu.matmul %91, %16, %cst_42 {dimension_numbers = #tpu.dot_dimension_numbers<[1], [0], [0], [1], [0, 0, 1, 1], [], []>} : vector<8x128xf32>, vector<128x128xf32>, vector<8x128xf32> -> vector<8x128xf32>
    %97 = vector.extract_strided_slice %94 {offsets = [0, 0], sizes = [8, 256], strides = [1, 1]} : vector<8x384xf32> to vector<8x256xf32>
    %98 = arith.addf %97, %95 : vector<8x256xf32>
    %99 = arith.negf %98 : vector<8x256xf32>
    %100 = math.exp %99 : vector<8x256xf32>
    %cst_43 = arith.constant 1.000000e+00 : f32
    %101 = vector.broadcast %cst_43 : f32 to vector<8x256xf32>
    %102 = arith.addf %101, %100 : vector<8x256xf32>
    %103 = arith.divf %101, %102 : vector<8x256xf32>
    %104 = vector.extract_strided_slice %103 {offsets = [0, 0], sizes = [8, 128], strides = [1, 1]} : vector<8x256xf32> to vector<8x128xf32>
    %105 = vector.extract_strided_slice %103 {offsets = [0, 128], sizes = [8, 128], strides = [1, 1]} : vector<8x256xf32> to vector<8x128xf32>
    %106 = vector.extract_strided_slice %94 {offsets = [0, 256], sizes = [8, 128], strides = [1, 1]} : vector<8x384xf32> to vector<8x128xf32>
    %107 = arith.addf %96, %14 : vector<8x128xf32>
    %108 = arith.mulf %104, %107 : vector<8x128xf32>
    %109 = arith.addf %106, %108 : vector<8x128xf32>
    %110 = math.tanh %109 : vector<8x128xf32>
    %cst_44 = arith.constant 1.000000e+00 : f32
    %111 = vector.broadcast %cst_44 : f32 to vector<8x128xf32>
    %112 = arith.subf %111, %105 : vector<8x128xf32>
    %113 = arith.mulf %112, %110 : vector<8x128xf32>
    %114 = arith.mulf %105, %91 : vector<8x128xf32>
    %115 = arith.addf %113, %114 : vector<8x128xf32>
    %116 = arith.index_cast %c2_i32 : i32 to index
    %c0_45 = arith.constant 0 : index
    %c0_46 = arith.constant 0 : index
    %117 = vector.load %arg3[%116, %c0_45, %c0_46] : memref<9x8x1xf32, #tpu.memory_space<vmem>>, vector<1x8x1xf32>
    %118 = vector.shape_cast %117 : vector<1x8x1xf32> to vector<8x1xf32>
    %119 = vector.shape_cast %118 : vector<8x1xf32> to vector<8x1xf32>
    %120 = vector.broadcast %119 : vector<8x1xf32> to vector<8x128xf32>
    %121 = arith.mulf %120, %115 : vector<8x128xf32>
    %122 = arith.index_cast %c2_i32 : i32 to index
    %c0_47 = arith.constant 0 : index
    %c0_48 = arith.constant 0 : index
    %123 = vector.load %arg9[%122, %c0_47, %c0_48] : memref<9x8x128xf32, #tpu.memory_space<vmem>>, vector<1x8x128xf32>
    %124 = vector.shape_cast %123 : vector<1x8x128xf32> to vector<8x128xf32>
    %125 = vector.shape_cast %121 : vector<8x128xf32> to vector<1x8x128xf32>
    tpu.vector_store %arg9[%122, %c0_47, %c0_48], %125 {strides = array<i32>} : memref<9x8x128xf32, #tpu.memory_space<vmem>>, vector<1x8x128xf32>,
    %126 = arith.subf %115, %91 : vector<8x128xf32>
    %127 = arith.mulf %120, %126 : vector<8x128xf32>
    %128 = arith.addf %91, %127 : vector<8x128xf32>
    %c3_i32 = arith.constant 3 : i32
    %129 = arith.index_cast %c3_i32 : i32 to index
    %c0_49 = arith.constant 0 : index
    %c0_50 = arith.constant 0 : index
    %130 = vector.load %arg11[%129, %c0_49, %c0_50] : memref<9x8x384xf32, #tpu.memory_space<vmem>>, vector<1x8x384xf32>
    %131 = vector.shape_cast %130 : vector<1x8x384xf32> to vector<8x384xf32>
    %cst_51 = arith.constant dense<0.000000e+00> : vector<8x256xf32>
    %132 = tpu.matmul %128, %15, %cst_51 {dimension_numbers = #tpu.dot_dimension_numbers<[1], [0], [0], [1], [0, 0, 1, 1], [], []>} : vector<8x128xf32>, vector<128x256xf32>, vector<8x256xf32> -> vector<8x256xf32>
    %cst_52 = arith.constant dense<0.000000e+00> : vector<8x128xf32>
    %133 = tpu.matmul %128, %16, %cst_52 {dimension_numbers = #tpu.dot_dimension_numbers<[1], [0], [0], [1], [0, 0, 1, 1], [], []>} : vector<8x128xf32>, vector<128x128xf32>, vector<8x128xf32> -> vector<8x128xf32>
    %134 = vector.extract_strided_slice %131 {offsets = [0, 0], sizes = [8, 256], strides = [1, 1]} : vector<8x384xf32> to vector<8x256xf32>
    %135 = arith.addf %134, %132 : vector<8x256xf32>
    %136 = arith.negf %135 : vector<8x256xf32>
    %137 = math.exp %136 : vector<8x256xf32>
    %cst_53 = arith.constant 1.000000e+00 : f32
    %138 = vector.broadcast %cst_53 : f32 to vector<8x256xf32>
    %139 = arith.addf %138, %137 : vector<8x256xf32>
    %140 = arith.divf %138, %139 : vector<8x256xf32>
    %141 = vector.extract_strided_slice %140 {offsets = [0, 0], sizes = [8, 128], strides = [1, 1]} : vector<8x256xf32> to vector<8x128xf32>
    %142 = vector.extract_strided_slice %140 {offsets = [0, 128], sizes = [8, 128], strides = [1, 1]} : vector<8x256xf32> to vector<8x128xf32>
    %143 = vector.extract_strided_slice %131 {offsets = [0, 256], sizes = [8, 128], strides = [1, 1]} : vector<8x384xf32> to vector<8x128xf32>
    %144 = arith.addf %133, %14 : vector<8x128xf32>
    %145 = arith.mulf %141, %144 : vector<8x128xf32>
    %146 = arith.addf %143, %145 : vector<8x128xf32>
    %147 = math.tanh %146 : vector<8x128xf32>
    %cst_54 = arith.constant 1.000000e+00 : f32
    %148 = vector.broadcast %cst_54 : f32 to vector<8x128xf32>
    %149 = arith.subf %148, %142 : vector<8x128xf32>
    %150 = arith.mulf %149, %147 : vector<8x128xf32>
    %151 = arith.mulf %142, %128 : vector<8x128xf32>
    %152 = arith.addf %150, %151 : vector<8x128xf32>
    %153 = arith.index_cast %c3_i32 : i32 to index
    %c0_55 = arith.constant 0 : index
    %c0_56 = arith.constant 0 : index
    %154 = vector.load %arg3[%153, %c0_55, %c0_56] : memref<9x8x1xf32, #tpu.memory_space<vmem>>, vector<1x8x1xf32>
    %155 = vector.shape_cast %154 : vector<1x8x1xf32> to vector<8x1xf32>
    %156 = vector.shape_cast %155 : vector<8x1xf32> to vector<8x1xf32>
    %157 = vector.broadcast %156 : vector<8x1xf32> to vector<8x128xf32>
    %158 = arith.mulf %157, %152 : vector<8x128xf32>
    %159 = arith.index_cast %c3_i32 : i32 to index
    %c0_57 = arith.constant 0 : index
    %c0_58 = arith.constant 0 : index
    %160 = vector.load %arg9[%159, %c0_57, %c0_58] : memref<9x8x128xf32, #tpu.memory_space<vmem>>, vector<1x8x128xf32>
    %161 = vector.shape_cast %160 : vector<1x8x128xf32> to vector<8x128xf32>
    %162 = vector.shape_cast %158 : vector<8x128xf32> to vector<1x8x128xf32>
    tpu.vector_store %arg9[%159, %c0_57, %c0_58], %162 {strides = array<i32>} : memref<9x8x128xf32, #tpu.memory_space<vmem>>, vector<1x8x128xf32>,
    %163 = arith.subf %152, %128 : vector<8x128xf32>
    %164 = arith.mulf %157, %163 : vector<8x128xf32>
    %165 = arith.addf %128, %164 : vector<8x128xf32>
    %c4_i32 = arith.constant 4 : i32
    %166 = arith.index_cast %c4_i32 : i32 to index
    %c0_59 = arith.constant 0 : index
    %c0_60 = arith.constant 0 : index
    %167 = vector.load %arg11[%166, %c0_59, %c0_60] : memref<9x8x384xf32, #tpu.memory_space<vmem>>, vector<1x8x384xf32>
    %168 = vector.shape_cast %167 : vector<1x8x384xf32> to vector<8x384xf32>
    %cst_61 = arith.constant dense<0.000000e+00> : vector<8x256xf32>
    %169 = tpu.matmul %165, %15, %cst_61 {dimension_numbers = #tpu.dot_dimension_numbers<[1], [0], [0], [1], [0, 0, 1, 1], [], []>} : vector<8x128xf32>, vector<128x256xf32>, vector<8x256xf32> -> vector<8x256xf32>
    %cst_62 = arith.constant dense<0.000000e+00> : vector<8x128xf32>
    %170 = tpu.matmul %165, %16, %cst_62 {dimension_numbers = #tpu.dot_dimension_numbers<[1], [0], [0], [1], [0, 0, 1, 1], [], []>} : vector<8x128xf32>, vector<128x128xf32>, vector<8x128xf32> -> vector<8x128xf32>
    %171 = vector.extract_strided_slice %168 {offsets = [0, 0], sizes = [8, 256], strides = [1, 1]} : vector<8x384xf32> to vector<8x256xf32>
    %172 = arith.addf %171, %169 : vector<8x256xf32>
    %173 = arith.negf %172 : vector<8x256xf32>
    %174 = math.exp %173 : vector<8x256xf32>
    %cst_63 = arith.constant 1.000000e+00 : f32
    %175 = vector.broadcast %cst_63 : f32 to vector<8x256xf32>
    %176 = arith.addf %175, %174 : vector<8x256xf32>
    %177 = arith.divf %175, %176 : vector<8x256xf32>
    %178 = vector.extract_strided_slice %177 {offsets = [0, 0], sizes = [8, 128], strides = [1, 1]} : vector<8x256xf32> to vector<8x128xf32>
    %179 = vector.extract_strided_slice %177 {offsets = [0, 128], sizes = [8, 128], strides = [1, 1]} : vector<8x256xf32> to vector<8x128xf32>
    %180 = vector.extract_strided_slice %168 {offsets = [0, 256], sizes = [8, 128], strides = [1, 1]} : vector<8x384xf32> to vector<8x128xf32>
    %181 = arith.addf %170, %14 : vector<8x128xf32>
    %182 = arith.mulf %178, %181 : vector<8x128xf32>
    %183 = arith.addf %180, %182 : vector<8x128xf32>
    %184 = math.tanh %183 : vector<8x128xf32>
    %cst_64 = arith.constant 1.000000e+00 : f32
    %185 = vector.broadcast %cst_64 : f32 to vector<8x128xf32>
    %186 = arith.subf %185, %179 : vector<8x128xf32>
    %187 = arith.mulf %186, %184 : vector<8x128xf32>
    %188 = arith.mulf %179, %165 : vector<8x128xf32>
    %189 = arith.addf %187, %188 : vector<8x128xf32>
    %190 = arith.index_cast %c4_i32 : i32 to index
    %c0_65 = arith.constant 0 : index
    %c0_66 = arith.constant 0 : index
    %191 = vector.load %arg3[%190, %c0_65, %c0_66] : memref<9x8x1xf32, #tpu.memory_space<vmem>>, vector<1x8x1xf32>
    %192 = vector.shape_cast %191 : vector<1x8x1xf32> to vector<8x1xf32>
    %193 = vector.shape_cast %192 : vector<8x1xf32> to vector<8x1xf32>
    %194 = vector.broadcast %193 : vector<8x1xf32> to vector<8x128xf32>
    %195 = arith.mulf %194, %189 : vector<8x128xf32>
    %196 = arith.index_cast %c4_i32 : i32 to index
    %c0_67 = arith.constant 0 : index
    %c0_68 = arith.constant 0 : index
    %197 = vector.load %arg9[%196, %c0_67, %c0_68] : memref<9x8x128xf32, #tpu.memory_space<vmem>>, vector<1x8x128xf32>
    %198 = vector.shape_cast %197 : vector<1x8x128xf32> to vector<8x128xf32>
    %199 = vector.shape_cast %195 : vector<8x128xf32> to vector<1x8x128xf32>
    tpu.vector_store %arg9[%196, %c0_67, %c0_68], %199 {strides = array<i32>} : memref<9x8x128xf32, #tpu.memory_space<vmem>>, vector<1x8x128xf32>,
    %200 = arith.subf %189, %165 : vector<8x128xf32>
    %201 = arith.mulf %194, %200 : vector<8x128xf32>
    %202 = arith.addf %165, %201 : vector<8x128xf32>
    %c5_i32 = arith.constant 5 : i32
    %203 = arith.index_cast %c5_i32 : i32 to index
    %c0_69 = arith.constant 0 : index
    %c0_70 = arith.constant 0 : index
    %204 = vector.load %arg11[%203, %c0_69, %c0_70] : memref<9x8x384xf32, #tpu.memory_space<vmem>>, vector<1x8x384xf32>
    %205 = vector.shape_cast %204 : vector<1x8x384xf32> to vector<8x384xf32>
    %cst_71 = arith.constant dense<0.000000e+00> : vector<8x256xf32>
    %206 = tpu.matmul %202, %15, %cst_71 {dimension_numbers = #tpu.dot_dimension_numbers<[1], [0], [0], [1], [0, 0, 1, 1], [], []>} : vector<8x128xf32>, vector<128x256xf32>, vector<8x256xf32> -> vector<8x256xf32>
    %cst_72 = arith.constant dense<0.000000e+00> : vector<8x128xf32>
    %207 = tpu.matmul %202, %16, %cst_72 {dimension_numbers = #tpu.dot_dimension_numbers<[1], [0], [0], [1], [0, 0, 1, 1], [], []>} : vector<8x128xf32>, vector<128x128xf32>, vector<8x128xf32> -> vector<8x128xf32>
    %208 = vector.extract_strided_slice %205 {offsets = [0, 0], sizes = [8, 256], strides = [1, 1]} : vector<8x384xf32> to vector<8x256xf32>
    %209 = arith.addf %208, %206 : vector<8x256xf32>
    %210 = arith.negf %209 : vector<8x256xf32>
    %211 = math.exp %210 : vector<8x256xf32>
    %cst_73 = arith.constant 1.000000e+00 : f32
    %212 = vector.broadcast %cst_73 : f32 to vector<8x256xf32>
    %213 = arith.addf %212, %211 : vector<8x256xf32>
    %214 = arith.divf %212, %213 : vector<8x256xf32>
    %215 = vector.extract_strided_slice %214 {offsets = [0, 0], sizes = [8, 128], strides = [1, 1]} : vector<8x256xf32> to vector<8x128xf32>
    %216 = vector.extract_strided_slice %214 {offsets = [0, 128], sizes = [8, 128], strides = [1, 1]} : vector<8x256xf32> to vector<8x128xf32>
    %217 = vector.extract_strided_slice %205 {offsets = [0, 256], sizes = [8, 128], strides = [1, 1]} : vector<8x384xf32> to vector<8x128xf32>
    %218 = arith.addf %207, %14 : vector<8x128xf32>
    %219 = arith.mulf %215, %218 : vector<8x128xf32>
    %220 = arith.addf %217, %219 : vector<8x128xf32>
    %221 = math.tanh %220 : vector<8x128xf32>
    %cst_74 = arith.constant 1.000000e+00 : f32
    %222 = vector.broadcast %cst_74 : f32 to vector<8x128xf32>
    %223 = arith.subf %222, %216 : vector<8x128xf32>
    %224 = arith.mulf %223, %221 : vector<8x128xf32>
    %225 = arith.mulf %216, %202 : vector<8x128xf32>
    %226 = arith.addf %224, %225 : vector<8x128xf32>
    %227 = arith.index_cast %c5_i32 : i32 to index
    %c0_75 = arith.constant 0 : index
    %c0_76 = arith.constant 0 : index
    %228 = vector.load %arg3[%227, %c0_75, %c0_76] : memref<9x8x1xf32, #tpu.memory_space<vmem>>, vector<1x8x1xf32>
    %229 = vector.shape_cast %228 : vector<1x8x1xf32> to vector<8x1xf32>
    %230 = vector.shape_cast %229 : vector<8x1xf32> to vector<8x1xf32>
    %231 = vector.broadcast %230 : vector<8x1xf32> to vector<8x128xf32>
    %232 = arith.mulf %231, %226 : vector<8x128xf32>
    %233 = arith.index_cast %c5_i32 : i32 to index
    %c0_77 = arith.constant 0 : index
    %c0_78 = arith.constant 0 : index
    %234 = vector.load %arg9[%233, %c0_77, %c0_78] : memref<9x8x128xf32, #tpu.memory_space<vmem>>, vector<1x8x128xf32>
    %235 = vector.shape_cast %234 : vector<1x8x128xf32> to vector<8x128xf32>
    %236 = vector.shape_cast %232 : vector<8x128xf32> to vector<1x8x128xf32>
    tpu.vector_store %arg9[%233, %c0_77, %c0_78], %236 {strides = array<i32>} : memref<9x8x128xf32, #tpu.memory_space<vmem>>, vector<1x8x128xf32>,
    %237 = arith.subf %226, %202 : vector<8x128xf32>
    %238 = arith.mulf %231, %237 : vector<8x128xf32>
    %239 = arith.addf %202, %238 : vector<8x128xf32>
    %c6_i32 = arith.constant 6 : i32
    %240 = arith.index_cast %c6_i32 : i32 to index
    %c0_79 = arith.constant 0 : index
    %c0_80 = arith.constant 0 : index
    %241 = vector.load %arg11[%240, %c0_79, %c0_80] : memref<9x8x384xf32, #tpu.memory_space<vmem>>, vector<1x8x384xf32>
    %242 = vector.shape_cast %241 : vector<1x8x384xf32> to vector<8x384xf32>
    %cst_81 = arith.constant dense<0.000000e+00> : vector<8x256xf32>
    %243 = tpu.matmul %239, %15, %cst_81 {dimension_numbers = #tpu.dot_dimension_numbers<[1], [0], [0], [1], [0, 0, 1, 1], [], []>} : vector<8x128xf32>, vector<128x256xf32>, vector<8x256xf32> -> vector<8x256xf32>
    %cst_82 = arith.constant dense<0.000000e+00> : vector<8x128xf32>
    %244 = tpu.matmul %239, %16, %cst_82 {dimension_numbers = #tpu.dot_dimension_numbers<[1], [0], [0], [1], [0, 0, 1, 1], [], []>} : vector<8x128xf32>, vector<128x128xf32>, vector<8x128xf32> -> vector<8x128xf32>
    %245 = vector.extract_strided_slice %242 {offsets = [0, 0], sizes = [8, 256], strides = [1, 1]} : vector<8x384xf32> to vector<8x256xf32>
    %246 = arith.addf %245, %243 : vector<8x256xf32>
    %247 = arith.negf %246 : vector<8x256xf32>
    %248 = math.exp %247 : vector<8x256xf32>
    %cst_83 = arith.constant 1.000000e+00 : f32
    %249 = vector.broadcast %cst_83 : f32 to vector<8x256xf32>
    %250 = arith.addf %249, %248 : vector<8x256xf32>
    %251 = arith.divf %249, %250 : vector<8x256xf32>
    %252 = vector.extract_strided_slice %251 {offsets = [0, 0], sizes = [8, 128], strides = [1, 1]} : vector<8x256xf32> to vector<8x128xf32>
    %253 = vector.extract_strided_slice %251 {offsets = [0, 128], sizes = [8, 128], strides = [1, 1]} : vector<8x256xf32> to vector<8x128xf32>
    %254 = vector.extract_strided_slice %242 {offsets = [0, 256], sizes = [8, 128], strides = [1, 1]} : vector<8x384xf32> to vector<8x128xf32>
    %255 = arith.addf %244, %14 : vector<8x128xf32>
    %256 = arith.mulf %252, %255 : vector<8x128xf32>
    %257 = arith.addf %254, %256 : vector<8x128xf32>
    %258 = math.tanh %257 : vector<8x128xf32>
    %cst_84 = arith.constant 1.000000e+00 : f32
    %259 = vector.broadcast %cst_84 : f32 to vector<8x128xf32>
    %260 = arith.subf %259, %253 : vector<8x128xf32>
    %261 = arith.mulf %260, %258 : vector<8x128xf32>
    %262 = arith.mulf %253, %239 : vector<8x128xf32>
    %263 = arith.addf %261, %262 : vector<8x128xf32>
    %264 = arith.index_cast %c6_i32 : i32 to index
    %c0_85 = arith.constant 0 : index
    %c0_86 = arith.constant 0 : index
    %265 = vector.load %arg3[%264, %c0_85, %c0_86] : memref<9x8x1xf32, #tpu.memory_space<vmem>>, vector<1x8x1xf32>
    %266 = vector.shape_cast %265 : vector<1x8x1xf32> to vector<8x1xf32>
    %267 = vector.shape_cast %266 : vector<8x1xf32> to vector<8x1xf32>
    %268 = vector.broadcast %267 : vector<8x1xf32> to vector<8x128xf32>
    %269 = arith.mulf %268, %263 : vector<8x128xf32>
    %270 = arith.index_cast %c6_i32 : i32 to index
    %c0_87 = arith.constant 0 : index
    %c0_88 = arith.constant 0 : index
    %271 = vector.load %arg9[%270, %c0_87, %c0_88] : memref<9x8x128xf32, #tpu.memory_space<vmem>>, vector<1x8x128xf32>
    %272 = vector.shape_cast %271 : vector<1x8x128xf32> to vector<8x128xf32>
    %273 = vector.shape_cast %269 : vector<8x128xf32> to vector<1x8x128xf32>
    tpu.vector_store %arg9[%270, %c0_87, %c0_88], %273 {strides = array<i32>} : memref<9x8x128xf32, #tpu.memory_space<vmem>>, vector<1x8x128xf32>,
    %274 = arith.subf %263, %239 : vector<8x128xf32>
    %275 = arith.mulf %268, %274 : vector<8x128xf32>
    %276 = arith.addf %239, %275 : vector<8x128xf32>
    %c7_i32 = arith.constant 7 : i32
    %277 = arith.index_cast %c7_i32 : i32 to index
    %c0_89 = arith.constant 0 : index
    %c0_90 = arith.constant 0 : index
    %278 = vector.load %arg11[%277, %c0_89, %c0_90] : memref<9x8x384xf32, #tpu.memory_space<vmem>>, vector<1x8x384xf32>
    %279 = vector.shape_cast %278 : vector<1x8x384xf32> to vector<8x384xf32>
    %cst_91 = arith.constant dense<0.000000e+00> : vector<8x256xf32>
    %280 = tpu.matmul %276, %15, %cst_91 {dimension_numbers = #tpu.dot_dimension_numbers<[1], [0], [0], [1], [0, 0, 1, 1], [], []>} : vector<8x128xf32>, vector<128x256xf32>, vector<8x256xf32> -> vector<8x256xf32>
    %cst_92 = arith.constant dense<0.000000e+00> : vector<8x128xf32>
    %281 = tpu.matmul %276, %16, %cst_92 {dimension_numbers = #tpu.dot_dimension_numbers<[1], [0], [0], [1], [0, 0, 1, 1], [], []>} : vector<8x128xf32>, vector<128x128xf32>, vector<8x128xf32> -> vector<8x128xf32>
    %282 = vector.extract_strided_slice %279 {offsets = [0, 0], sizes = [8, 256], strides = [1, 1]} : vector<8x384xf32> to vector<8x256xf32>
    %283 = arith.addf %282, %280 : vector<8x256xf32>
    %284 = arith.negf %283 : vector<8x256xf32>
    %285 = math.exp %284 : vector<8x256xf32>
    %cst_93 = arith.constant 1.000000e+00 : f32
    %286 = vector.broadcast %cst_93 : f32 to vector<8x256xf32>
    %287 = arith.addf %286, %285 : vector<8x256xf32>
    %288 = arith.divf %286, %287 : vector<8x256xf32>
    %289 = vector.extract_strided_slice %288 {offsets = [0, 0], sizes = [8, 128], strides = [1, 1]} : vector<8x256xf32> to vector<8x128xf32>
    %290 = vector.extract_strided_slice %288 {offsets = [0, 128], sizes = [8, 128], strides = [1, 1]} : vector<8x256xf32> to vector<8x128xf32>
    %291 = vector.extract_strided_slice %279 {offsets = [0, 256], sizes = [8, 128], strides = [1, 1]} : vector<8x384xf32> to vector<8x128xf32>
    %292 = arith.addf %281, %14 : vector<8x128xf32>
    %293 = arith.mulf %289, %292 : vector<8x128xf32>
    %294 = arith.addf %291, %293 : vector<8x128xf32>
    %295 = math.tanh %294 : vector<8x128xf32>
    %cst_94 = arith.constant 1.000000e+00 : f32
    %296 = vector.broadcast %cst_94 : f32 to vector<8x128xf32>
    %297 = arith.subf %296, %290 : vector<8x128xf32>
    %298 = arith.mulf %297, %295 : vector<8x128xf32>
    %299 = arith.mulf %290, %276 : vector<8x128xf32>
    %300 = arith.addf %298, %299 : vector<8x128xf32>
    %301 = arith.index_cast %c7_i32 : i32 to index
    %c0_95 = arith.constant 0 : index
    %c0_96 = arith.constant 0 : index
    %302 = vector.load %arg3[%301, %c0_95, %c0_96] : memref<9x8x1xf32, #tpu.memory_space<vmem>>, vector<1x8x1xf32>
    %303 = vector.shape_cast %302 : vector<1x8x1xf32> to vector<8x1xf32>
    %304 = vector.shape_cast %303 : vector<8x1xf32> to vector<8x1xf32>
    %305 = vector.broadcast %304 : vector<8x1xf32> to vector<8x128xf32>
    %306 = arith.mulf %305, %300 : vector<8x128xf32>
    %307 = arith.index_cast %c7_i32 : i32 to index
    %c0_97 = arith.constant 0 : index
    %c0_98 = arith.constant 0 : index
    %308 = vector.load %arg9[%307, %c0_97, %c0_98] : memref<9x8x128xf32, #tpu.memory_space<vmem>>, vector<1x8x128xf32>
    %309 = vector.shape_cast %308 : vector<1x8x128xf32> to vector<8x128xf32>
    %310 = vector.shape_cast %306 : vector<8x128xf32> to vector<1x8x128xf32>
    tpu.vector_store %arg9[%307, %c0_97, %c0_98], %310 {strides = array<i32>} : memref<9x8x128xf32, #tpu.memory_space<vmem>>, vector<1x8x128xf32>,
    %311 = arith.subf %300, %276 : vector<8x128xf32>
    %312 = arith.mulf %305, %311 : vector<8x128xf32>
    %313 = arith.addf %276, %312 : vector<8x128xf32>
    %c8_i32 = arith.constant 8 : i32
    %314 = arith.index_cast %c8_i32 : i32 to index
    %c0_99 = arith.constant 0 : index
    %c0_100 = arith.constant 0 : index
    %315 = vector.load %arg11[%314, %c0_99, %c0_100] : memref<9x8x384xf32, #tpu.memory_space<vmem>>, vector<1x8x384xf32>
    %316 = vector.shape_cast %315 : vector<1x8x384xf32> to vector<8x384xf32>
    %cst_101 = arith.constant dense<0.000000e+00> : vector<8x256xf32>
    %317 = tpu.matmul %313, %15, %cst_101 {dimension_numbers = #tpu.dot_dimension_numbers<[1], [0], [0], [1], [0, 0, 1, 1], [], []>} : vector<8x128xf32>, vector<128x256xf32>, vector<8x256xf32> -> vector<8x256xf32>
    %cst_102 = arith.constant dense<0.000000e+00> : vector<8x128xf32>
    %318 = tpu.matmul %313, %16, %cst_102 {dimension_numbers = #tpu.dot_dimension_numbers<[1], [0], [0], [1], [0, 0, 1, 1], [], []>} : vector<8x128xf32>, vector<128x128xf32>, vector<8x128xf32> -> vector<8x128xf32>
    %319 = vector.extract_strided_slice %316 {offsets = [0, 0], sizes = [8, 256], strides = [1, 1]} : vector<8x384xf32> to vector<8x256xf32>
    %320 = arith.addf %319, %317 : vector<8x256xf32>
    %321 = arith.negf %320 : vector<8x256xf32>
    %322 = math.exp %321 : vector<8x256xf32>
    %cst_103 = arith.constant 1.000000e+00 : f32
    %323 = vector.broadcast %cst_103 : f32 to vector<8x256xf32>
    %324 = arith.addf %323, %322 : vector<8x256xf32>
    %325 = arith.divf %323, %324 : vector<8x256xf32>
    %326 = vector.extract_strided_slice %325 {offsets = [0, 0], sizes = [8, 128], strides = [1, 1]} : vector<8x256xf32> to vector<8x128xf32>
    %327 = vector.extract_strided_slice %325 {offsets = [0, 128], sizes = [8, 128], strides = [1, 1]} : vector<8x256xf32> to vector<8x128xf32>
    %328 = vector.extract_strided_slice %316 {offsets = [0, 256], sizes = [8, 128], strides = [1, 1]} : vector<8x384xf32> to vector<8x128xf32>
    %329 = arith.addf %318, %14 : vector<8x128xf32>
    %330 = arith.mulf %326, %329 : vector<8x128xf32>
    %331 = arith.addf %328, %330 : vector<8x128xf32>
    %332 = math.tanh %331 : vector<8x128xf32>
    %cst_104 = arith.constant 1.000000e+00 : f32
    %333 = vector.broadcast %cst_104 : f32 to vector<8x128xf32>
    %334 = arith.subf %333, %327 : vector<8x128xf32>
    %335 = arith.mulf %334, %332 : vector<8x128xf32>
    %336 = arith.mulf %327, %313 : vector<8x128xf32>
    %337 = arith.addf %335, %336 : vector<8x128xf32>
    %338 = arith.index_cast %c8_i32 : i32 to index
    %c0_105 = arith.constant 0 : index
    %c0_106 = arith.constant 0 : index
    %339 = vector.load %arg3[%338, %c0_105, %c0_106] : memref<9x8x1xf32, #tpu.memory_space<vmem>>, vector<1x8x1xf32>
    %340 = vector.shape_cast %339 : vector<1x8x1xf32> to vector<8x1xf32>
    %341 = vector.shape_cast %340 : vector<8x1xf32> to vector<8x1xf32>
    %342 = vector.broadcast %341 : vector<8x1xf32> to vector<8x128xf32>
    %343 = arith.mulf %342, %337 : vector<8x128xf32>
    %344 = arith.index_cast %c8_i32 : i32 to index
    %c0_107 = arith.constant 0 : index
    %c0_108 = arith.constant 0 : index
    %345 = vector.load %arg9[%344, %c0_107, %c0_108] : memref<9x8x128xf32, #tpu.memory_space<vmem>>, vector<1x8x128xf32>
    %346 = vector.shape_cast %345 : vector<1x8x128xf32> to vector<8x128xf32>
    %347 = vector.shape_cast %343 : vector<8x128xf32> to vector<1x8x128xf32>
    tpu.vector_store %arg9[%344, %c0_107, %c0_108], %347 {strides = array<i32>} : memref<9x8x128xf32, #tpu.memory_space<vmem>>, vector<1x8x128xf32>,
    %348 = arith.subf %337, %313 : vector<8x128xf32>
    %349 = arith.mulf %342, %348 : vector<8x128xf32>
    %350 = arith.addf %313, %349 : vector<8x128xf32>
    %c9_i32 = arith.constant 9 : i32
    %c0_109 = arith.constant 0 : index
    %c0_110 = arith.constant 0 : index
    %351 = vector.load %arg10[%c0_109, %c0_110] : memref<8x128xf32, #tpu.memory_space<vmem>>, vector<8x128xf32>
    tpu.vector_store %arg10[%c0_109, %c0_110], %350 {strides = array<i32>} : memref<8x128xf32, #tpu.memory_space<vmem>>, vector<8x128xf32>,
    return
  }
  func.func @transform_0(%arg0: i32, %arg1: i32) -> (i32, i32, i32) {
    %c0_i32 = arith.constant 0 : i32
    %c0_i32_0 = arith.constant 0 : i32
    return %arg1, %arg0, %c0_i32 : i32, i32, i32
  }
  func.func @transform_1(%arg0: i32, %arg1: i32) -> (i32, i32, i32) {
    %c0_i32 = arith.constant 0 : i32
    %c0_i32_0 = arith.constant 0 : i32
    return %arg1, %arg0, %c0_i32 : i32, i32, i32
  }
  func.func @transform_2(%arg0: i32, %arg1: i32) -> (i32, i32) {
    %c0_i32 = arith.constant 0 : i32
    %c0_i32_0 = arith.constant 0 : i32
    %c0_i32_1 = arith.constant 0 : i32
    return %c0_i32, %c0_i32_0 : i32, i32
  }
  func.func @transform_3(%arg0: i32, %arg1: i32) -> (i32, i32) {
    %c0_i32 = arith.constant 0 : i32
    %c0_i32_0 = arith.constant 0 : i32
    %c0_i32_1 = arith.constant 0 : i32
    return %c0_i32, %c0_i32_0 : i32, i32
  }
  func.func @transform_4(%arg0: i32, %arg1: i32) -> (i32, i32) {
    %c0_i32 = arith.constant 0 : i32
    %c0_i32_0 = arith.constant 0 : i32
    %c0_i32_1 = arith.constant 0 : i32
    return %c0_i32, %c0_i32_0 : i32, i32
  }
  func.func @transform_5(%arg0: i32, %arg1: i32) -> (i32, i32) {
    %c0_i32 = arith.constant 0 : i32
    %c0_i32_0 = arith.constant 0 : i32
    %c0_i32_1 = arith.constant 0 : i32
    return %c0_i32, %c0_i32_0 : i32, i32
  }
  func.func @transform_6(%arg0: i32, %arg1: i32) -> (i32, i32) {
    %c0_i32 = arith.constant 0 : i32
    %c0_i32_0 = arith.constant 0 : i32
    %c0_i32_1 = arith.constant 0 : i32
    return %c0_i32, %c0_i32_0 : i32, i32
  }
  func.func @transform_7(%arg0: i32, %arg1: i32) -> (i32, i32, i32) {
    %c0_i32 = arith.constant 0 : i32
    %c0_i32_0 = arith.constant 0 : i32
    return %arg1, %arg0, %c0_i32 : i32, i32, i32
  }
  func.func @transform_8(%arg0: i32, %arg1: i32) -> (i32, i32) {
    %c0_i32 = arith.constant 0 : i32
    %c0_i32_0 = arith.constant 0 : i32
    return %arg0, %c0_i32 : i32, i32
  }
}

</mosaic_0001>

<bundles_post_ra>
// kernel: tpu_custom_call.1
= control target key start
LH: loop header
LB: loop body
LE: loop exit
PB: predicated region body
PF: predicated region fallthrough
CT: control target
= control target key end

     0   :  { %14 = vsyncpa [#allocation4], 0  ;;  %s4199_s0 = inlined_call_operand.vmem [shape: f32[9,8,128], index: 0, kind: input, shape index: {}]   ;;  %s4200_s1 = inlined_call_operand.vmem [shape: f32[9,8,1], index: 1, kind: input, shape index: {}]   ;;  %s4201_s2 = inlined_call_operand.hbm [shape: f32[128,384], index: 2, kind: input, shape index: {}]   ;;  %s4202_s3 = inlined_call_operand.vmem [shape: f32[1,384], index: 3, kind: input, shape index: {}]   ;;  %s4203_s4 = inlined_call_operand.hbm [shape: f32[128,256], index: 4, kind: input, shape index: {}]   ;;  %s4204_s5 = inlined_call_operand.hbm [shape: f32[128,128], index: 5, kind: input, shape index: {}]   ;;  %s4205_s6 = inlined_call_operand.vmem [shape: f32[1,128], index: 6, kind: input, shape index: {}]   ;;  %s4206_s7 = inlined_call_operand.hbm [shape: f32[9,8,128], index: 7, kind: output, shape index: {0}]   ;;  %s4207_s8 = inlined_call_operand.hbm [shape: f32[8,128], index: 8, kind: output, shape index: {1}]  }
   0x1   :  { %15 = vsyncpa [#allocation7], 0 }
   0x2   :  { %16 = vsyncpa [#allocation5], 0 }
   0x3   :  { %17 = vsyncpa [#allocation11], 0  ;;  %s3504_s27 = smov [#allocation6]   ;;  %s3386_s9 = scalar_lea.hbm %s4203_s4, 4096 }
   0x4   :  { %s41_s28 = sshll.u32 %s3504_s27, 4  ;;  %p3387_p0 = scmp.ne.s32.totalorder %s4203_s4, %s3386_s9  ;;  %s42_s28 = int_to_ptr.vmem [resolvable:$true] %s41_s28 }
   0x5   :  { %p3390_p1 = scmp.lt.u32.totalorder %s3386_s9, %s4203_s4 }
   0x7   :  { %p3392_p2 = pnand %p3390_p1, %p3387_p0 }
   0x9   :  { %3395 = shalt.err (!%p3392_p2)
}
   0xa   :  { %s3396_s14 = scalar_lea.vmem %s42_s28, 4096  ;;  %p3401_p4 = scmp.lt.s32.totalorder %s42_s28, %s42_s28 }
   0xb   :  { %p3397_p3 = scmp.ne.s32.totalorder %s42_s28, %s3396_s14  ;;  %p3402_p5 = scmp.lt.s32.totalorder %s3396_s14, %s3396_s14 }
   0xd   :  { %p3403_p6 = por %p3402_p5, %p3401_p4 }
   0xf   :  { %p3404_p7 = pnand %p3403_p6, %p3397_p3 }
  0x11   :  { %3407 = shalt.err (!%p3404_p7)
}
  0x12   :  { %s3505_s15 = smov 256   ;;  %s3506_s16 = smov 16  }
  0x13   :  { %47 = dma.hbm_to_vmem [thread:$0]  %s4203_s4, 4096, %s42_s28, [#allocation7], %s3505_s15, %s3505_s15, %s3506_s16  }
  0x14   :  { %s3507_s19 = smov [#allocation3]   ;;  %s3408_s23 = scalar_lea.hbm %s4201_s2, 6144 }
  0x15   :  { %s27_s20 = sshll.u32 %s3507_s19, 4  ;;  %p3409_p8 = scmp.ne.s32.totalorder %s4201_s2, %s3408_s23  ;;  %s28_s20 = int_to_ptr.vmem [resolvable:$true] %s27_s20 }
  0x16   :  { %p3412_p9 = scmp.lt.u32.totalorder %s3408_s23, %s4201_s2 }
  0x18   :  { %p3414_p10 = pnand %p3412_p9, %p3409_p8 }
  0x1a   :  { %3417 = shalt.err (!%p3414_p10)
}
  0x1b   :  { %s3418_s29 = scalar_lea.vmem %s28_s20, 6144  ;;  %p3423_p12 = scmp.lt.s32.totalorder %s28_s20, %s28_s20 }
  0x1c   :  { %p3419_p11 = scmp.ne.s32.totalorder %s28_s20, %s3418_s29  ;;  %p3424_p13 = scmp.lt.s32.totalorder %s3418_s29, %s3418_s29 }
  0x1e   :  { %p3425_p0 = por %p3424_p13, %p3423_p12 }
  0x20   :  { %p3426_p1 = pnand %p3425_p0, %p3419_p11 }
  0x22   :  { %3429 = shalt.err (!%p3426_p1)
}
  0x23   :  { %s3508_s4 = smov 384   ;;  %s3509_s28 = smov 24  }
  0x24   :  { %33 = dma.hbm_to_vmem [thread:$0]  %s4201_s2, 6144, %s28_s20, [#allocation4], %s3508_s4, %s3508_s4, %s3509_s28  }
  0x25   :  { %s3510_s10 = smov [#allocation8]   ;;  %s3430_s14 = scalar_lea.hbm %s4204_s5, 2048 }
  0x26   :  { %s53_s11 = sshll.u32 %s3510_s10, 4  ;;  %p3431_p2 = scmp.ne.s32.totalorder %s4204_s5, %s3430_s14  ;;  %s54_s11 = int_to_ptr.vmem [resolvable:$true] %s53_s11 }
  0x27   :  { %p3434_p3 = scmp.lt.u32.totalorder %s3430_s14, %s4204_s5 }
  0x29   :  { %p3436_p4 = pnand %p3434_p3, %p3431_p2 }
  0x2b   :  { %3439 = shalt.err (!%p3436_p4)
}
  0x2c   :  { %s3440_s19 = scalar_lea.vmem %s54_s11, 2048  ;;  %p3445_p6 = scmp.lt.s32.totalorder %s54_s11, %s54_s11 }
  0x2d   :  { %p3441_p5 = scmp.ne.s32.totalorder %s54_s11, %s3440_s19  ;;  %p3446_p7 = scmp.lt.s32.totalorder %s3440_s19, %s3440_s19 }
  0x2f   :  { %p3447_p8 = por %p3446_p7, %p3445_p6 }
  0x31   :  { %p3448_p9 = pnand %p3447_p8, %p3441_p5 }
  0x33   :  { %3451 = shalt.err (!%p3448_p9)
}
  0x34   :  { %s3511_s2 = smov 128   ;;  %s3512_s20 = smov 8  }
  0x35   :  { %59 = dma.hbm_to_vmem [thread:$0]  %s4204_s5, 2048, %s54_s11, [#allocation7], %s3511_s2, %s3511_s2, %s3512_s20  }
  0x36   :  { %3496 = dma.done.wait [#allocation4], 6144  }
  0x37   :  { %3497 = vsyncadd [#allocation4], 4294961152 }
  0x38   :  { %3498 = dma.done.wait [#allocation7], 6144  }
  0x39   :  { %3499 = vsyncadd [#allocation7], 4294961152  ;;  %v3513_v0 = vmov 0.0|0.0   ;;  %v3514_v1 = vmov 0.0   ;;  %vm3515_vm0 = vmmov 0   ;;  %v3516_v2 = vmov 0  }
  0x3a   :  { %2714 = vmatprep.subr.bf16.mxu1 %v3513_v0  ;;  %214 = vmatprep.mubr.f32.mxu0 %v3514_v1  ;;  %v86_v3 = vld [vmem:[#allocation3 + $0x8] sm:$0xff]  ;;  %v89_v4 = vld [vmem:[#allocation3 + $0x20] sm:$0xff]  ;;  %v88_v7 = vld [vmem:[#allocation3 + $0x18] sm:$0xff]  ;;  %s3517_s15 = smov [#allocation9]  }
  0x3b   :  { %2340 = vmatprep.mubr.msk.f32.mxu1 %vm3515_vm0, %v3514_v1  ;;  %3293 = vset.pattern.permute.xlu0 %v3516_v2  ;;  %v85_v5 = vld [vmem:[#allocation3] sm:$0xff]  ;;  %v2682_v6 = vpack.c.bf16 %v89_v4, %v86_v3  ;;  %v92_v8 = vld [vmem:[#allocation3 + $0x38] sm:$0xff]  ;;  %v95_v9 = vld [vmem:[#allocation3 + $0x50] sm:$0xff]  ;;  %s2076_s16 = sshll.u32 %s3517_s15, 4  ;;  %s2077_s16 = int_to_ptr.vmem [resolvable:$true] %s2076_s16 }
  0x3c   :  { %3294 = vset.pattern.permute.xlu1 %v3516_v2  ;;  %v2684_v10 = vpack.c.bf16 %v88_v7, %v85_v5  ;;  %v2686_v11 = vpack.c.bf16 %v95_v9, %v92_v8  ;;  %v91_v12 = vld [vmem:[#allocation3 + $0x30] sm:$0xff]  ;;  %v94_v13 = vld [vmem:[#allocation3 + $0x48] sm:$0xff]  ;;  %v101_v15 = vld [vmem:[#allocation3 + $0x80] sm:$0xff]  ;;  %s3452_s18 = scalar_lea.vmem %s2077_s16, 1152  ;;  %p3457_p11 = scmp.lt.s32.totalorder %s2077_s16, %s2077_s16 }
  0x3d   :  { %v98_v14 = vld [vmem:[#allocation3 + $0x68] sm:$0xff]  ;;  %2683 = vmatprep.subr.bf16.mxu0 %v2682_v6  ;;  %v2688_v16 = vpack.c.bf16 %v94_v13, %v91_v12  ;;  %v97_v18 = vld [vmem:[#allocation3 + $0x60] sm:$0xff]  ;;  %v100_v19 = vld [vmem:[#allocation3 + $0x78] sm:$0xff]  ;;  %p3453_p10 = scmp.ne.s32.totalorder %s2077_s16, %s3452_s18  ;;  %p3458_p12 = scmp.lt.s32.totalorder %s3452_s18, %s3452_s18 }
  0x3e   :  { %2685 = vmatpush1.bf16.msra.mxu0 %v2684_v10  ;;  %v2690_v17 = vpack.c.bf16 %v101_v15, %v98_v14  ;;  %v104_v20 = vld [vmem:[#allocation3 + $0x98] sm:$0xff]  ;;  %v107_v21 = vld [vmem:[#allocation3 + $0xb0] sm:$0xff]  ;;  %v2692_v22 = vpack.c.bf16 %v100_v19, %v97_v18  ;;  %v106_v25 = vld [vmem:[#allocation3 + $0xa8] sm:$0xff] }
  0x3f   :  { %2687 = vmatprep.subr.bf16.mxu0 %v2686_v11  ;;  %v103_v23 = vld [vmem:[#allocation3 + $0x90] sm:$0xff]  ;;  %v2694_v24 = vpack.c.bf16 %v107_v21, %v104_v20  ;;  %v90_v27 = vld [vmem:[#allocation3 + $0x28] sm:$0xff]  ;;  %v113_v29 = vld [vmem:[#allocation3 + $0xe0] sm:$0xff]  ;;  %p3459_p13 = por %p3458_p12, %p3457_p11 }
  0x40   :  { %v87_v26 = vld [vmem:[#allocation3 + $0x10] sm:$0xff]  ;;  %v110_v28 = vld [vmem:[#allocation3 + $0xc8] sm:$0xff]  ;;  %v93_v31 = vld [vmem:[#allocation3 + $0x40] sm:$0xff]  ;;  %v2696_v33 = vpack.c.bf16 %v106_v25, %v103_v23 }
  0x41   :  { %v2715_v30 = vpack.c.bf16 %v90_v27, %v87_v26  ;;  %v96_v32 = vld [vmem:[#allocation3 + $0x58] sm:$0xff]  ;;  %v2698_v35 = vpack.c.bf16 %v113_v29, %v110_v28  ;;  %v109_v36 = vld [vmem:[#allocation3 + $0xc0] sm:$0xff]  ;;  %v99_v38 = vld [vmem:[#allocation3 + $0x70] sm:$0xff]  ;;  %p3460_p0 = pnand %p3459_p13, %p3453_p10 }
  0x42   :  { %2689 = vmatpush1.bf16.msra.mxu0 %v2688_v16  ;;  %v2718_v34 = vpack.c.bf16 %v96_v32, %v93_v31  ;;  %v112_v37 = vld [vmem:[#allocation3 + $0xd8] sm:$0xff]  ;;  %v119_v40 = vld [vmem:[#allocation3 + $0x110] sm:$0xff]  ;;  %v102_v41 = vld [vmem:[#allocation3 + $0x88] sm:$0xff] }
  0x43   :  { %2691 = vmatprep.subr.bf16.mxu0 %v2690_v17  ;;  %2716 = vmatpush3.bf16.msra.mxu1 %v2715_v30  ;;  %v116_v39 = vld [vmem:[#allocation3 + $0xf8] sm:$0xff]  ;;  %v2700_v42 = vpack.c.bf16 %v112_v37, %v109_v36  ;;  %v115_v43 = vld [vmem:[#allocation3 + $0xf0] sm:$0xff]  ;;  %v2721_v44 = vpack.c.bf16 %v102_v41, %v99_v38  ;;  %v118_v46 = vld [vmem:[#allocation3 + $0x108] sm:$0xff] }
  0x44   :  { %2717 = vmatprep.subr.bf16.mxu1 %v3513_v0  ;;  %v2702_v45 = vpack.c.bf16 %v119_v40, %v116_v39  ;;  %v105_v47 = vld [vmem:[#allocation3 + $0xa0] sm:$0xff]  ;;  %v108_v48 = vld [vmem:[#allocation3 + $0xb8] sm:$0xff]  ;;  %v122_v49 = vld [vmem:[#allocation3 + $0x128] sm:$0xff]  ;;  %v2704_v51 = vpack.c.bf16 %v118_v46, %v115_v43 }
  0x45   :  { %v125_v50 = vld [vmem:[#allocation3 + $0x140] sm:$0xff]  ;;  %v2724_v53 = vpack.c.bf16 %v108_v48, %v105_v47  ;;  %v124_v55 = vld [vmem:[#allocation3 + $0x138] sm:$0xff]  ;;  %v111_v56 = vld [vmem:[#allocation3 + $0xd0] sm:$0xff] }
  0x46   :  { %2693 = vmatpush1.bf16.msra.mxu0 %v2692_v22  ;;  %v121_v52 = vld [vmem:[#allocation3 + $0x120] sm:$0xff]  ;;  %v2706_v54 = vpack.c.bf16 %v125_v50, %v122_v49  ;;  %v114_v57 = vld [vmem:[#allocation3 + $0xe8] sm:$0xff]  ;;  %v128_v58 = vld [vmem:[#allocation3 + $0x158] sm:$0xff] }
  0x47   :  { %2695 = vmatprep.subr.bf16.mxu0 %v2694_v24  ;;  %2719 = vmatpush3.bf16.msra.mxu1 %v2718_v34  ;;  %v131_v59 = vld [vmem:[#allocation3 + $0x170] sm:$0xff]  ;;  %v2708_v60 = vpack.c.bf16 %v124_v55, %v121_v52  ;;  %v2727_v62 = vpack.c.bf16 %v114_v57, %v111_v56  ;;  %v130_v2 = vld [vmem:[#allocation3 + $0x168] sm:$0xff]  ;;  %v117_v3 = vld [vmem:[#allocation3 + $0x100] sm:$0xff] }
  0x48   :  { %2720 = vmatprep.subr.bf16.mxu1 %v3513_v0  ;;  %v127_v61 = vld [vmem:[#allocation3 + $0x150] sm:$0xff]  ;;  %v2710_v63 = vpack.c.bf16 %v131_v59, %v128_v58  ;;  %v120_v4 = vld [vmem:[#allocation3 + $0x118] sm:$0xff]  ;;  %v414_v5 = vld [vmem:[#allocation6 + $0x8] sm:$0xff] }
  0x49   :  { %v416_v6 = vld [vmem:[#allocation6 + $0x18] sm:$0xff]  ;;  %v2712_v7 = vpack.c.bf16 %v130_v2, %v127_v61  ;;  %v2730_v8 = vpack.c.bf16 %v120_v4, %v117_v3  ;;  %v413_v10 = vld [vmem:[#allocation6] sm:$0xff]  ;;  %v415_v11 = vld [vmem:[#allocation6 + $0x10] sm:$0xff] }
  0x4a   :  { %2697 = vmatpush1.bf16.msra.mxu0 %v2696_v33  ;;  %v3611_v9 = vpack.c.bf16 %v416_v6, %v414_v5  ;;  %v418_v12 = vld [vmem:[#allocation6 + $0x28] sm:$0xff]  ;;  %v420_v13 = vld [vmem:[#allocation6 + $0x38] sm:$0xff]  ;;  %v123_v14 = vld [vmem:[#allocation3 + $0x130] sm:$0xff]  ;;  %v3617_v17 = vpack.c.bf16 %v415_v11, %v413_v10 }
  0x4b   :  { %2699 = vmatprep.subr.bf16.mxu0 %v2698_v35  ;;  %2722 = vmatpush3.bf16.msra.mxu1 %v2721_v44  ;;  %v126_v15 = vld [vmem:[#allocation3 + $0x148] sm:$0xff]  ;;  %v76_v16 = vld [vmem:[%s4199_s0] sm:$0xff]  ;;  %v3620_v18 = vpack.c.bf16 %v420_v13, %v418_v12  ;;  %v419_v20 = vld [vmem:[#allocation6 + $0x30] sm:$0xff] }
  0x4c   :  { %2723 = vmatprep.subr.bf16.mxu1 %v3513_v0  ;;  %v417_v19 = vld [vmem:[#allocation6 + $0x20] sm:$0xff]  ;;  %v422_v21 = vld [vmem:[#allocation6 + $0x48] sm:$0xff]  ;;  %v2733_v22 = vpack.c.bf16 %v126_v15, %v123_v14  ;;  %v424_v23 = vld [vmem:[#allocation6 + $0x58] sm:$0xff] }
  0x4d   :  { %v129_v24 = vld [vmem:[#allocation3 + $0x160] sm:$0xff]  ;;  %v132_v25 = vld [vmem:[#allocation3 + $0x178] sm:$0xff]  ;;  %v77_v27 = vld [vmem:[%s4199_s0 + $0x8] sm:$0xff]  ;;  %v3631_v28 = vpack.c.bf16 %v419_v20, %v417_v19  ;;  %v3634_v29 = vpack.c.bf16 %v424_v23, %v422_v21 }
  0x4e   :  { %2701 = vmatpush1.bf16.msra.mxu0 %v2700_v42  ;;  %v627_v26 = vld [vmem:[%s4200_s1] sm:$0xff]  ;;  %v423_v31 = vld [vmem:[#allocation6 + $0x50] sm:$0xff]  ;;  %v2736_v32 = vpack.c.bf16 %v132_v25, %v129_v24  ;;  %v426_v33 = vld [vmem:[#allocation6 + $0x68] sm:$0xff] }
  0x4f   :  { %2703 = vmatprep.subr.bf16.mxu0 %v2702_v45  ;;  %2725 = vmatpush3.bf16.msra.mxu1 %v2724_v53  ;;  %v421_v30 = vld [vmem:[#allocation6 + $0x40] sm:$0xff]  ;;  %v428_v34 = vld [vmem:[#allocation6 + $0x78] sm:$0xff]  ;;  %v446_v36 = vld [vmem:[#allocation8 + $0x8] sm:$0xff] }
  0x50   :  { %2726 = vmatprep.subr.bf16.mxu1 %v3513_v0  ;;  %630 = vperm.xlu0 %3293, %v627_v26   ;;  %v445_v35 = vld [vmem:[#allocation8] sm:$0xff]  ;;  %v2108_v37 = vld [vmem:[%s4200_s1 + $0x8] sm:$0xff]  ;;  %v78_v38 = vld [vmem:[%s4199_s0 + $0x10] sm:$0xff]  ;;  %v3645_v39 = vpack.c.bf16 %v423_v31, %v421_v30  ;;  %v3648_v40 = vpack.c.bf16 %v428_v34, %v426_v33 }
  0x51   :  { %v425_v41 = vld [vmem:[#allocation6 + $0x60] sm:$0xff]  ;;  %v427_v42 = vld [vmem:[#allocation6 + $0x70] sm:$0xff]  ;;  %v430_v43 = vld [vmem:[#allocation6 + $0x88] sm:$0xff]  ;;  %v3651_v45 = vpack.c.bf16 %v446_v36, %v445_v35 }
  0x52   :  { %2705 = vmatpush1.bf16.msra.mxu0 %v2704_v51  ;;  %v432_v44 = vld [vmem:[#allocation6 + $0x98] sm:$0xff]  ;;  %v447_v46 = vld [vmem:[#allocation8 + $0x10] sm:$0xff]  ;;  %v3658_v49 = vpack.c.bf16 %v427_v42, %v425_v41  ;;  %v429_v51 = vld [vmem:[#allocation6 + $0x80] sm:$0xff] }
  0x53   :  { %2707 = vmatprep.subr.bf16.mxu0 %v2706_v54  ;;  %2728 = vmatpush3.bf16.msra.mxu1 %v2727_v62  ;;  %v448_v47 = vld [vmem:[#allocation8 + $0x18] sm:$0xff]  ;;  %v3661_v50 = vpack.c.bf16 %v432_v44, %v430_v43  ;;  %v431_v52 = vld [vmem:[#allocation6 + $0x90] sm:$0xff]  ;;  %v434_v53 = vld [vmem:[#allocation6 + $0xa8] sm:$0xff]  ;;  %v135_v44 = vlaneseq }
  0x54   :  { %2729 = vmatprep.subr.bf16.mxu1 %v3513_v0  ;;  %808 = vperm.xlu0 %3293, %v2108_v37   ;;  %v79_v48 = vld [vmem:[%s4199_s0 + $0x18] sm:$0xff]  ;;  %v3666_v55 = vpack.c.bf16 %v448_v47, %v447_v46  ;;  %v449_v56 = vld [vmem:[#allocation8 + $0x20] sm:$0xff]  ;;  %v450_v57 = vld [vmem:[#allocation8 + $0x28] sm:$0xff]  ;;  %v3674_v59 = vpack.c.bf16 %v431_v52, %v429_v51 }
  0x55   :  { %v436_v54 = vld [vmem:[#allocation6 + $0xb8] sm:$0xff]  ;;  %v80_v58 = vld [vmem:[%s4199_s0 + $0x20] sm:$0xff]  ;;  %v435_v62 = vld [vmem:[#allocation6 + $0xb0] sm:$0xff]  ;;  %v3682_v3 = vpack.c.bf16 %v450_v57, %v449_v56  ;;  %v136_v46 = vshrl.u32 %v135_v44, 7 }
  0x56   :  { %2709 = vmatpush1.bf16.msra.mxu0 %v2708_v60  ;;  %v3677_v60 = vpack.c.bf16 %v436_v54, %v434_v53  ;;  %v433_v61 = vld [vmem:[#allocation6 + $0xa0] sm:$0xff]  ;;  %v440_v2 = vld [vmem:[#allocation6 + $0xd8] sm:$0xff]  ;;  %v451_v4 = vld [vmem:[#allocation8 + $0x30] sm:$0xff] }
  0x57   :  { %2711 = vmatprep.subr.bf16.mxu0 %v2710_v63  ;;  %2731 = vmatpush3.bf16.msra.mxu1 %v2730_v8  ;;  %v438_v63 = vld [vmem:[#allocation6 + $0xc8] sm:$0xff]  ;;  %v452_v5 = vld [vmem:[#allocation8 + $0x38] sm:$0xff]  ;;  %v437_v10 = vld [vmem:[#allocation6 + $0xc0] sm:$0xff]  ;;  %v145_v47 = vsub.s32 2, %v136_v46 }
  0x58   :  { %2732 = vmatprep.subr.bf16.mxu1 %v3513_v0  ;;  %v81_v6 = vld [vmem:[%s4199_s0 + $0x28] sm:$0xff]  ;;  %v3693_v8 = vpack.c.bf16 %v440_v2, %v438_v63  ;;  %v439_v11 = vld [vmem:[#allocation6 + $0xd0] sm:$0xff]  ;;  %v444_v13 = vld [vmem:[#allocation6 + $0xf8] sm:$0xff]  ;;  %v3698_v14 = vpack.c.bf16 %v452_v5, %v451_v4 }
  0x59   :  { %v442_v12 = vld [vmem:[#allocation6 + $0xe8] sm:$0xff]  ;;  %v453_v15 = vld [vmem:[#allocation8 + $0x40] sm:$0xff]  ;;  %v82_v19 = vld [vmem:[%s4199_s0 + $0x30] sm:$0xff]  ;;  %v3706_v20 = vpack.c.bf16 %v439_v11, %v437_v10  ;;  %v137_v11 = vsub.s32 0, %v136_v46 }
  0x5a   :  { %2713 = vmatpush1.bf16.msra.mxu0 %v2712_v7  ;;  %v3690_v7 = vpack.c.bf16 %v435_v62, %v433_v61  ;;  %v3709_v21 = vpack.c.bf16 %v444_v13, %v442_v12  ;;  %v443_v23 = vld [vmem:[#allocation6 + $0xf0] sm:$0xff]  ;;  %v456_v26 = vld [vmem:[#allocation8 + $0x58] sm:$0xff]  ;;  %v457_v33 = vld [vmem:[#allocation8 + $0x60] sm:$0xff] }
  0x5b   :  { %2739 = vmatprep.subr.bf16.mxu0 %v3611_v9  ;;  %2734 = vmatpush3.bf16.msra.mxu1 %v2733_v22  ;;  %v441_v22 = vld [vmem:[#allocation6 + $0xe0] sm:$0xff]  ;;  %v455_v25 = vld [vmem:[#allocation8 + $0x50] sm:$0xff]  ;;  %v458_v34 = vld [vmem:[#allocation8 + $0x68] sm:$0xff] }
  0x5c   :  { %2735 = vmatprep.subr.bf16.mxu1 %v3513_v0  ;;  %v3722_v30 = vpack.c.bf16 %v443_v23, %v441_v22  ;;  %v3728_v31 = vpack.c.bf16 %v456_v26, %v455_v25  ;;  %v84_v35 = vld [vmem:[%s4199_s0 + $0x40] sm:$0xff]  ;;  %v3742_v36 = vpack.c.bf16 %v458_v34, %v457_v33  ;;  %v2123_v37 = vld [vmem:[%s4200_s1 + $0x30] sm:$0xff]  ;;  %v460_v41 = vld [vmem:[#allocation8 + $0x78] sm:$0xff] }
  0x5d   :  { %215 = vmatmul.mubr.f32.vlgmr.msra.gmra.mrb[0].mxu0 %v76_v16  ;;  %v2129_v43 = vld [vmem:[%s4200_s1 + $0x40] sm:$0xff] }
  0x5e   :  { %2741 = vmatpush1.bf16.msra.mxu0 %v3617_v17  ;;  %220 = vmatprep.mubr.f32.mxu0 %v3514_v1 }
  0x5f   :  { %2743 = vmatprep.subr.bf16.mxu0 %v3620_v18  ;;  %2737 = vmatpush3.bf16.msra.mxu1 %v2736_v32  ;;  %v2117_v32 = vld [vmem:[%s4200_s1 + $0x20] sm:$0xff] }
  0x60   :  { %2770 = vmatprep.subr.bf16.mxu1 %v3513_v0  ;;  %1345 = vperm.xlu0 %3293, %v2117_v32  }
  0x61   :  { %221 = vmatmul.mubr.f32.gmra.mrb[2].mxu0 %v77_v27 }
  0x62   :  { %2745 = vmatpush1.bf16.msra.mxu0 %v3631_v28  ;;  %226 = vmatprep.mubr.f32.mxu0 %v3514_v1 }
  0x63   :  { %2747 = vmatprep.subr.bf16.mxu0 %v3634_v29  ;;  %2341 = vmatmul.mubr.f32.vlgmr.msra.gmra.mrb[0].mxu1 %v76_v16  ;;  %v454_v16 = vld [vmem:[#allocation8 + $0x48] sm:$0xff] }
  0x64   :  { %2772 = vmatpush3.bf16.msra.mxu1 %v3651_v45  ;;  %2343 = vmatprep.mubr.msk.f32.mxu1 %vm3515_vm0, %v3514_v1  ;;  %v3714_v24 = vpack.c.bf16 %v454_v16, %v453_v15  ;;  %v141_v16 = vsub.s32 1, %v136_v46 }
  0x65   :  { %227 = vmatmul.mubr.f32.gmra.mrb[4].mxu0 %v78_v38  ;;  %2773 = vmatprep.subr.bf16.mxu1 %v3513_v0 }
  0x66   :  { %2749 = vmatpush1.bf16.msra.mxu0 %v3645_v39  ;;  %232 = vmatprep.mubr.f32.mxu0 %v3514_v1 }
  0x67   :  { %2751 = vmatprep.subr.bf16.mxu0 %v3648_v40  ;;  %2344 = vmatmul.mubr.f32.gmra.mrb[2].mxu1 %v77_v27  ;;  %v83_v27 = vld [vmem:[%s4199_s0 + $0x38] sm:$0xff] }
  0x68   :  { %2775 = vmatpush3.bf16.msra.mxu1 %v3666_v55  ;;  %2346 = vmatprep.mubr.msk.f32.mxu1 %vm3515_vm0, %v3514_v1 }
  0x69   :  { %233 = vmatmul.mubr.f32.gmra.mrb[6].mxu0 %v79_v48  ;;  %2776 = vmatprep.subr.bf16.mxu1 %v3513_v0 }
  0x6a   :  { %238 = vmatprep.mubr.f32.mxu0 %v3514_v1  ;;  %2753 = vmatpush1.bf16.msra.mxu0 %v3658_v49 }
  0x6b   :  { %2755 = vmatprep.subr.bf16.mxu0 %v3661_v50  ;;  %2347 = vmatmul.mubr.f32.gmra.mrb[4].mxu1 %v78_v38  ;;  %v459_v38 = vld [vmem:[#allocation8 + $0x70] sm:$0xff] }
  0x6c   :  { %2778 = vmatpush3.bf16.msra.mxu1 %v3682_v3  ;;  %2349 = vmatprep.mubr.msk.f32.mxu1 %vm3515_vm0, %v3514_v1  ;;  %v3753_v42 = vpack.c.bf16 %v460_v41, %v459_v38 }
  0x6d   :  { %239 = vmatmul.mubr.f32.gmra.mrb[8].mxu0 %v80_v58  ;;  %2779 = vmatprep.subr.bf16.mxu1 %v3513_v0 }
  0x6e   :  { %244 = vmatprep.mubr.f32.mxu0 %v3514_v1  ;;  %2757 = vmatpush1.bf16.msra.mxu0 %v3674_v59 }
  0x6f   :  { %2759 = vmatprep.subr.bf16.mxu0 %v3677_v60  ;;  %2350 = vmatmul.mubr.f32.gmra.mrb[6].mxu1 %v79_v48  ;;  %v133_v48 = vld [vmem:[%s4202_s3] sm:$0x7] }
  0x70   :  { %2352 = vmatprep.mubr.msk.f32.mxu1 %vm3515_vm0, %v3514_v1  ;;  %2781 = vmatpush3.bf16.msra.mxu1 %v3698_v14  ;;  %v146_v53 = vrot.slane %v133_v48, %v145_v47 }
  0x71   :  { %245 = vmatmul.mubr.f32.gmra.mrb[10].mxu0 %v81_v6  ;;  %2782 = vmatprep.subr.bf16.mxu1 %v3513_v0 }
  0x72   :  { %250 = vmatprep.mubr.f32.mxu0 %v3514_v1  ;;  %2761 = vmatpush1.bf16.msra.mxu0 %v3690_v7 }
  0x73   :  { %2763 = vmatprep.subr.bf16.mxu0 %v3693_v8  ;;  %2353 = vmatmul.mubr.f32.gmra.mrb[8].mxu1 %v80_v58 }
  0x74   :  { %2355 = vmatprep.mubr.msk.f32.mxu1 %vm3515_vm0, %v3514_v1  ;;  %2784 = vmatpush3.bf16.msra.mxu1 %v3714_v24 }
  0x75   :  { %251 = vmatmul.mubr.f32.gmra.mrb[12].mxu0 %v82_v19  ;;  %2785 = vmatprep.subr.bf16.mxu1 %v3513_v0 }
  0x76   :  { %256 = vmatprep.mubr.f32.mxu0 %v3514_v1  ;;  %2765 = vmatpush1.bf16.msra.mxu0 %v3706_v20 }
  0x77   :  { %2767 = vmatprep.subr.bf16.mxu0 %v3709_v21  ;;  %2356 = vmatmul.mubr.f32.gmra.mrb[10].mxu1 %v81_v6 }
  0x78   :  { %2358 = vmatprep.mubr.msk.f32.mxu1 %vm3515_vm0, %v3514_v1  ;;  %2787 = vmatpush3.bf16.msra.mxu1 %v3728_v31 }
  0x79   :  { %257 = vmatmul.mubr.f32.gmra.mrb[14].mxu0 %v83_v27  ;;  %2788 = vmatprep.subr.bf16.mxu1 %v3513_v0 }
  0x7a   :  { %262 = vmatprep.mubr.f32.mxu0 %v3514_v1  ;;  %2769 = vmatpush1.bf16.msra.mxu0 %v3722_v30 }
  0x7b   :  { %2795 = vmatprep.subr.bf16.mxu0 %v3611_v9  ;;  %2359 = vmatmul.mubr.f32.gmra.mrb[12].mxu1 %v82_v19  ;;  %v3815_v19 = vrot.slane %v133_v48, %v137_v11 }
  0x7c   :  { %1703 = vperm.xlu0 %3293, %v2123_v37   ;;  %2361 = vmatprep.mubr.msk.f32.mxu1 %vm3515_vm0, %v3514_v1 }
  0x7d   :  { %263 = vmatmul.mubr.f32.gmra.mrb[16].mxu0 %v84_v35  ;;  %2790 = vmatpush3.bf16.msra.mxu1 %v3742_v36 }
  0x7e   :  { %529 = vmatprep.mubr.f32.mxu0 %v3514_v1  ;;  %2791 = vmatprep.subr.bf16.mxu1 %v3513_v0 }
  0x7f   :  { %2362 = vmatmul.mubr.f32.gmra.mrb[14].mxu1 %v83_v27  ;;  %v3819_v27 = vrot.slane %v133_v48, %v141_v16 }
  0x80   :  { %2061 = vperm.xlu0 %3293, %v2129_v43   ;;  %2364 = vmatprep.mubr.msk.f32.mxu1 %vm3515_vm0, %v3514_v1 }
  0x81   :  { %530 = vmatmul.mubr.f32.vlgmr.msra.gmra.mrb[0].mxu0 %v3514_v1  ;;  %2793 = vmatpush3.bf16.msra.mxu1 %v3753_v42 }
  0x82   :  { %2797 = vmatpush1.bf16.msra.mxu0 %v3617_v17  ;;  %706 = vmatprep.mubr.f32.mxu0 %v3514_v1 }
  0x83   :  { %2826 = vmatprep.subr.bf16.mxu1 %v3513_v0  ;;  %2799 = vmatprep.subr.bf16.mxu0 %v3620_v18 }
  0x84   :  { %2365 = vmatmul.mubr.f32.gmra.mrb[16].mxu1 %v84_v35 }
  0x85   :  { %2399 = vmatprep.mubr.msk.f32.mxu1 %vm3515_vm0, %v3514_v1 }
  0x86   :  { %2801 = vmatpush1.bf16.msra.mxu0 %v3631_v28 }
  0x87   :  { %2803 = vmatprep.subr.bf16.mxu0 %v3634_v29 }
  0x88   :  { %2400 = vmatmul.mubr.f32.vlgmr.msra.gmra.mrb[18].mxu1 %v3514_v1 }
  0x89   :  { %2828 = vmatpush3.bf16.msra.mxu1 %v3651_v45  ;;  %2434 = vmatprep.mubr.msk.f32.mxu1 %vm3515_vm0, %v3514_v1 }
  0x8a   :  { %2805 = vmatpush1.bf16.msra.mxu0 %v3645_v39  ;;  %2829 = vmatprep.subr.bf16.mxu1 %v3513_v0 }
  0x8b   :  { %2807 = vmatprep.subr.bf16.mxu0 %v3648_v40 }
  0x8d   :  { %2831 = vmatpush3.bf16.msra.mxu1 %v3666_v55 }
  0x8e   :  { %2809 = vmatpush1.bf16.msra.mxu0 %v3658_v49  ;;  %2832 = vmatprep.subr.bf16.mxu1 %v3513_v0 }
  0x8f   :  { %2811 = vmatprep.subr.bf16.mxu0 %v3661_v50 }
  0x91   :  { %2834 = vmatpush3.bf16.msra.mxu1 %v3682_v3 }
  0x92   :  { %2813 = vmatpush1.bf16.msra.mxu0 %v3674_v59  ;;  %2835 = vmatprep.subr.bf16.mxu1 %v3513_v0 }
  0x93   :  { %2815 = vmatprep.subr.bf16.mxu0 %v3677_v60 }
  0x95   :  { %2837 = vmatpush3.bf16.msra.mxu1 %v3698_v14 }
  0x96   :  { %2817 = vmatpush1.bf16.msra.mxu0 %v3690_v7  ;;  %2838 = vmatprep.subr.bf16.mxu1 %v3513_v0 }
  0x97   :  { %2819 = vmatprep.subr.bf16.mxu0 %v3693_v8 }
  0x99   :  { %2840 = vmatpush3.bf16.msra.mxu1 %v3714_v24 }
  0x9a   :  { %2821 = vmatpush1.bf16.msra.mxu0 %v3706_v20  ;;  %2841 = vmatprep.subr.bf16.mxu1 %v3513_v0 }
  0x9b   :  { %2823 = vmatprep.subr.bf16.mxu0 %v3709_v21 }
  0x9d   :  { %2843 = vmatpush3.bf16.msra.mxu1 %v3728_v31 }
  0x9e   :  { %2825 = vmatpush1.bf16.msra.mxu0 %v3722_v30  ;;  %2844 = vmatprep.subr.bf16.mxu1 %v3513_v0 }
  0x9f   :  { %2851 = vmatprep.subr.bf16.mxu0 %v3611_v9 }
  0xa1   :  { %2846 = vmatpush3.bf16.msra.mxu1 %v3742_v36 }
  0xa2   :  { %2847 = vmatprep.subr.bf16.mxu1 %v3513_v0 }
  0xa5   :  { %2849 = vmatpush3.bf16.msra.mxu1 %v3753_v42 }
  0xa6   :  { %2882 = vmatprep.subr.bf16.mxu1 %v3513_v0 }
 0x136   :  { %v335_v51 = vpop.f32.mrb[0].mxu1 }
 0x137   :  { %v2342_v52 = vpop.f32.mrb[1].mxu1 }
 0x13a   :  { %v340_v54 = vpop.f32.mrb[2].mxu1 }
 0x13b   :  { %v3805_v56 = vadd.f32 %v340_v54, %v146_v53  ;;  %v2345_v57 = vpop.f32.mrb[3].mxu1 }
 0x13e   :  { %v345_v58 = vpop.f32.mrb[4].mxu1 }
 0x13f   :  { %v3807_v61 = vadd.f32 %v345_v58, %v146_v53  ;;  %v2348_v62 = vpop.f32.mrb[5].mxu1 }
 0x140   :  { %v3830_v62 = vld [vmem:[%s4205_s6] ss:$0 sm:$0xff] }
 0x142   :  { %v350_v63 = vpop.f32.mrb[6].mxu1 }
 0x143   :  { %v3809_v2 = vadd.f32 %v350_v63, %v146_v53  ;;  %v2351_v4 = vpop.f32.mrb[7].mxu1 }
 0x146   :  { %v355_v5 = vpop.f32.mrb[8].mxu1 }
 0x147   :  { %v3811_v6 = vadd.f32 %v355_v5, %v146_v53  ;;  %v2354_v10 = vpop.f32.mrb[9].mxu1 }
 0x148   :  { %v336_v10 = vadd.f32 %v335_v51, %v146_v53  ;;  %v2111_v51 = vld [vmem:[%s4200_s1 + $0x10] sm:$0xff] }
 0x149   :  { %987 = vperm.xlu1 %3294, %v2111_v51  }
 0x14a   :  { %v360_v12 = vpop.f32.mrb[10].mxu1 }
 0x14b   :  { %v3813_v13 = vadd.f32 %v360_v12, %v146_v53  ;;  %v2357_v15 = vpop.f32.mrb[11].mxu1 }
 0x14e   :  { %v365_v22 = vpop.f32.mrb[12].mxu1 }
 0x14f   :  { %v3817_v23 = vadd.f32 %v365_v22, %v146_v53  ;;  %v2360_v25 = vpop.f32.mrb[13].mxu1 }
 0x152   :  { %v370_v34 = vpop.f32.mrb[14].mxu1 }
 0x153   :  { %v3822_v37 = vadd.f32 %v370_v34, %v146_v53  ;;  %v2363_v38 = vpop.f32.mrb[15].mxu1 }
 0x154   :  { %v531_v26 = vpop.f32.mrb[0].mxu0  ;;  %v2126_v38 = vld [vmem:[%s4200_s1 + $0x38] sm:$0xff] }
 0x155   :  { %v3242_v32 = vadd.f32 %v531_v26, %v3815_v19  ;;  %v533_v33 = vpop.f32.mrb[1].mxu0 }
 0x156   :  { %v3243_v41 = vadd.f32 %v533_v33, %v3819_v27  ;;  %v631_v33 = vpop.permute.xlu0 %630 }
 0x157   :  { %v2104_v35 = vmul.f32 -1.442695, %v3242_v32  ;;  %v375_v43 = vpop.f32.mrb[16].mxu1 }
 0x158   :  { %v3825_v44 = vadd.f32 %v375_v43, %v146_v53  ;;  %v2366_v46 = vpop.f32.mrb[17].mxu1  ;;  %v2105_v47 = vmul.f32 -1.442695, %v3243_v41  ;;  %v2114_v53 = vld [vmem:[%s4200_s1 + $0x18] sm:$0xff] }
 0x159   :  { %3295 = vpow2.f32 %v2104_v35  ;;  %1166 = vperm.xlu1 %3294, %v2114_v53   ;;  %v2120_v35 = vld [vmem:[%s4200_s1 + $0x28] sm:$0xff] }
 0x15a   :  { %3297 = vpow2.f32 %v2105_v47  ;;  %v809_v51 = vpop.permute.xlu0 %808 }
 0x15b   :  { %v616_v52 = vpop.f32.mrb[18].mxu1 }
 0x15c   :  { %v2401_v54 = vpop.f32.mrb[19].mxu1  ;;  %v617_v4 = vadd.f32 %v3830_v62, %v616_v52 }
 0x15d   :  { %1524 = vperm.xlu1 %3294, %v2120_v35  }
 0x161   :  { %1882 = vperm.xlu1 %3294, %v2126_v38  }
 0x163   :  { %v3296_v48 = vpop.eup %3295 }
 0x164   :  { %v544_v57 = vadd.f32 1.0, %v3296_v48  ;;  %v3298_v58 = vpop.eup %3297 }
 0x165   :  { %v545_v63 = vadd.f32 1.0, %v3298_v58 }
 0x166   :  { %3299 = vrcp.f32 %v544_v57 }
 0x167   :  { %3301 = vrcp.f32 %v545_v63 }
 0x170   :  { %v3300_v5 = vpop.eup %3299 }
 0x171   :  { %v620_v11 = vmul.f32 %v3300_v5, %v617_v4  ;;  %v3302_v15 = vpop.eup %3301 }
 0x172   :  { %v623_v16 = vsub.f32 1.0, %v3302_v15  ;;  %v625_v26 = vmul.f32 0.0, %v3302_v15 }
 0x173   :  { %v621_v12 = vadd.f32 %v620_v11, %v336_v10 }
 0x175   :  { %3303 = vtanh.f32 %v621_v12 }
 0x17f   :  { %v3304_v22 = vpop.eup %3303 }
 0x180   :  { %v624_v25 = vmul.f32 %v3304_v22, %v623_v16 }
 0x182   :  { %v626_v32 = vadd.f32 %v625_v26, %v624_v25 }
 0x184   :  { %v3833_v34 = vmul.f32 %v631_v33, %v626_v32 }
 0x186   :  { %634 = vst [vmem:[#allocation9] sm:$0xff] %v3833_v34  ;;  %707 = vmatmul.mubr.f32.vlgmr.msra.gmra.mrb[2].mxu0 %v3833_v34  ;;  %2435 = vmatmul.mubr.f32.vlgmr.msra.gmra.mrb[20].mxu1 %v3833_v34 }
 0x187   :  { %2853 = vmatpush1.bf16.msra.mxu0 %v3617_v17  ;;  %2884 = vmatpush3.bf16.msra.mxu1 %v3651_v45 }
 0x188   :  { %2855 = vmatprep.subr.bf16.mxu0 %v3620_v18  ;;  %2885 = vmatprep.subr.bf16.mxu1 %v3513_v0 }
 0x189   :  { %885 = vmatprep.mubr.f32.mxu0 %v3514_v1  ;;  %2469 = vmatprep.mubr.msk.f32.mxu1 %vm3515_vm0, %v3514_v1 }
 0x18b   :  { %2857 = vmatpush1.bf16.msra.mxu0 %v3631_v28  ;;  %2887 = vmatpush3.bf16.msra.mxu1 %v3666_v55 }
 0x18c   :  { %2859 = vmatprep.subr.bf16.mxu0 %v3634_v29  ;;  %2888 = vmatprep.subr.bf16.mxu1 %v3513_v0 }
 0x18f   :  { %2861 = vmatpush1.bf16.msra.mxu0 %v3645_v39  ;;  %2890 = vmatpush3.bf16.msra.mxu1 %v3682_v3 }
 0x190   :  { %2863 = vmatprep.subr.bf16.mxu0 %v3648_v40  ;;  %2891 = vmatprep.subr.bf16.mxu1 %v3513_v0 }
 0x193   :  { %2865 = vmatpush1.bf16.msra.mxu0 %v3658_v49  ;;  %2893 = vmatpush3.bf16.msra.mxu1 %v3698_v14 }
 0x194   :  { %2867 = vmatprep.subr.bf16.mxu0 %v3661_v50  ;;  %2894 = vmatprep.subr.bf16.mxu1 %v3513_v0 }
 0x197   :  { %2869 = vmatpush1.bf16.msra.mxu0 %v3674_v59  ;;  %2896 = vmatpush3.bf16.msra.mxu1 %v3714_v24 }
 0x198   :  { %2871 = vmatprep.subr.bf16.mxu0 %v3677_v60  ;;  %2897 = vmatprep.subr.bf16.mxu1 %v3513_v0 }
 0x19b   :  { %2873 = vmatpush1.bf16.msra.mxu0 %v3690_v7  ;;  %2899 = vmatpush3.bf16.msra.mxu1 %v3728_v31 }
 0x19c   :  { %2875 = vmatprep.subr.bf16.mxu0 %v3693_v8  ;;  %2900 = vmatprep.subr.bf16.mxu1 %v3513_v0 }
 0x19f   :  { %2877 = vmatpush1.bf16.msra.mxu0 %v3706_v20  ;;  %2902 = vmatpush3.bf16.msra.mxu1 %v3742_v36 }
 0x1a0   :  { %2879 = vmatprep.subr.bf16.mxu0 %v3709_v21  ;;  %2903 = vmatprep.subr.bf16.mxu1 %v3513_v0 }
 0x1a3   :  { %2881 = vmatpush1.bf16.msra.mxu0 %v3722_v30  ;;  %2905 = vmatpush3.bf16.msra.mxu1 %v3753_v42 }
 0x1a4   :  { %2907 = vmatprep.subr.bf16.mxu0 %v3611_v9  ;;  %2938 = vmatprep.subr.bf16.mxu1 %v3513_v0 }
 0x259   :  { %v708_v41 = vpop.f32.mrb[2].mxu0  ;;  %v793_v43 = vpop.f32.mrb[20].mxu1 }
 0x25a   :  { %v3244_v46 = vadd.f32 %v708_v41, %v3815_v19  ;;  %v710_v47 = vpop.f32.mrb[3].mxu0  ;;  %v2436_v52 = vpop.f32.mrb[21].mxu1  ;;  %v794_v10 = vadd.f32 %v3830_v62, %v793_v43 }
 0x25b   :  { %v3245_v48 = vadd.f32 %v710_v47, %v3819_v27 }
 0x25c   :  { %v2106_v54 = vmul.f32 -1.442695, %v3244_v46 }
 0x25d   :  { %v2107_v57 = vmul.f32 -1.442695, %v3245_v48 }
 0x25e   :  { %3305 = vpow2.f32 %v2106_v54 }
 0x25f   :  { %3307 = vpow2.f32 %v2107_v57 }
 0x268   :  { %v3306_v58 = vpop.eup %3305 }
 0x269   :  { %v721_v63 = vadd.f32 1.0, %v3306_v58  ;;  %v3308_v4 = vpop.eup %3307 }
 0x26a   :  { %v722_v5 = vadd.f32 1.0, %v3308_v4 }
 0x26b   :  { %3309 = vrcp.f32 %v721_v63 }
 0x26c   :  { %3311 = vrcp.f32 %v722_v5 }
 0x275   :  { %v3310_v11 = vpop.eup %3309 }
 0x276   :  { %v797_v12 = vmul.f32 %v3310_v11, %v794_v10  ;;  %v3312_v16 = vpop.eup %3311 }
 0x277   :  { %v800_v22 = vsub.f32 1.0, %v3312_v16  ;;  %v802_v32 = vmul.f32 %v3312_v16, %v3833_v34 }
 0x278   :  { %v798_v15 = vadd.f32 %v797_v12, %v3805_v56 }
 0x27a   :  { %3313 = vtanh.f32 %v798_v15 }
 0x284   :  { %v3314_v25 = vpop.eup %3313 }
 0x285   :  { %v801_v26 = vmul.f32 %v3314_v25, %v800_v22 }
 0x287   :  { %v803_v33 = vadd.f32 %v802_v32, %v801_v26 }
 0x289   :  { %v811_v53 = vmul.f32 %v809_v51, %v803_v33  ;;  %v814_v35 = vsub.f32 %v803_v33, %v3833_v34  ;;  %v988_v33 = vpop.permute.xlu1 %987 }
 0x28b   :  { %813 = vst [vmem:[#allocation9 + $0x8] sm:$0xff] %v811_v53  ;;  %v815_v38 = vmul.f32 %v814_v35, %v809_v51 }
 0x28d   :  { %v3892_v41 = vadd.f32 %v815_v38, %v3833_v34 }
 0x28f   :  { %886 = vmatmul.mubr.f32.vlgmr.msra.gmra.mrb[4].mxu0 %v3892_v41  ;;  %2470 = vmatmul.mubr.f32.vlgmr.msra.gmra.mrb[22].mxu1 %v3892_v41 }
 0x290   :  { %2909 = vmatpush1.bf16.msra.mxu0 %v3617_v17  ;;  %2940 = vmatpush3.bf16.msra.mxu1 %v3651_v45 }
 0x291   :  { %2911 = vmatprep.subr.bf16.mxu0 %v3620_v18  ;;  %2941 = vmatprep.subr.bf16.mxu1 %v3513_v0 }
 0x292   :  { %1064 = vmatprep.mubr.f32.mxu0 %v3514_v1  ;;  %2504 = vmatprep.mubr.msk.f32.mxu1 %vm3515_vm0, %v3514_v1 }
 0x294   :  { %2913 = vmatpush1.bf16.msra.mxu0 %v3631_v28  ;;  %2943 = vmatpush3.bf16.msra.mxu1 %v3666_v55 }
 0x295   :  { %2915 = vmatprep.subr.bf16.mxu0 %v3634_v29  ;;  %2944 = vmatprep.subr.bf16.mxu1 %v3513_v0 }
 0x298   :  { %2917 = vmatpush1.bf16.msra.mxu0 %v3645_v39  ;;  %2946 = vmatpush3.bf16.msra.mxu1 %v3682_v3 }
 0x299   :  { %2919 = vmatprep.subr.bf16.mxu0 %v3648_v40  ;;  %2947 = vmatprep.subr.bf16.mxu1 %v3513_v0 }
 0x29c   :  { %2921 = vmatpush1.bf16.msra.mxu0 %v3658_v49  ;;  %2949 = vmatpush3.bf16.msra.mxu1 %v3698_v14 }
 0x29d   :  { %2923 = vmatprep.subr.bf16.mxu0 %v3661_v50  ;;  %2950 = vmatprep.subr.bf16.mxu1 %v3513_v0 }
 0x2a0   :  { %2925 = vmatpush1.bf16.msra.mxu0 %v3674_v59  ;;  %2952 = vmatpush3.bf16.msra.mxu1 %v3714_v24 }
 0x2a1   :  { %2927 = vmatprep.subr.bf16.mxu0 %v3677_v60  ;;  %2953 = vmatprep.subr.bf16.mxu1 %v3513_v0 }
 0x2a4   :  { %2929 = vmatpush1.bf16.msra.mxu0 %v3690_v7  ;;  %2955 = vmatpush3.bf16.msra.mxu1 %v3728_v31 }
 0x2a5   :  { %2931 = vmatprep.subr.bf16.mxu0 %v3693_v8  ;;  %2956 = vmatprep.subr.bf16.mxu1 %v3513_v0 }
 0x2a8   :  { %2933 = vmatpush1.bf16.msra.mxu0 %v3706_v20  ;;  %2958 = vmatpush3.bf16.msra.mxu1 %v3742_v36 }
 0x2a9   :  { %2935 = vmatprep.subr.bf16.mxu0 %v3709_v21  ;;  %2959 = vmatprep.subr.bf16.mxu1 %v3513_v0 }
 0x2ac   :  { %2937 = vmatpush1.bf16.msra.mxu0 %v3722_v30  ;;  %2961 = vmatpush3.bf16.msra.mxu1 %v3753_v42 }
 0x2ad   :  { %2963 = vmatprep.subr.bf16.mxu0 %v3611_v9  ;;  %2994 = vmatprep.subr.bf16.mxu1 %v3513_v0 }
 0x362   :  { %v887_v56 = vpop.f32.mrb[4].mxu0  ;;  %v972_v34 = vpop.f32.mrb[22].mxu1 }
 0x363   :  { %v3246_v43 = vadd.f32 %v887_v56, %v3815_v19  ;;  %v889_v46 = vpop.f32.mrb[5].mxu0  ;;  %v2471_v47 = vpop.f32.mrb[23].mxu1  ;;  %v973_v5 = vadd.f32 %v3830_v62, %v972_v34 }
 0x364   :  { %v3247_v54 = vadd.f32 %v889_v46, %v3819_v27 }
 0x365   :  { %v2109_v52 = vmul.f32 -1.442695, %v3246_v43 }
 0x366   :  { %v2110_v48 = vmul.f32 -1.442695, %v3247_v54 }
 0x367   :  { %3315 = vpow2.f32 %v2109_v52 }
 0x368   :  { %3317 = vpow2.f32 %v2110_v48 }
 0x371   :  { %v3316_v57 = vpop.eup %3315 }
 0x372   :  { %v900_v58 = vadd.f32 1.0, %v3316_v57  ;;  %v3318_v63 = vpop.eup %3317 }
 0x373   :  { %v901_v4 = vadd.f32 1.0, %v3318_v63 }
 0x374   :  { %3319 = vrcp.f32 %v900_v58 }
 0x375   :  { %3321 = vrcp.f32 %v901_v4 }
 0x37e   :  { %v3320_v10 = vpop.eup %3319 }
 0x37f   :  { %v976_v11 = vmul.f32 %v3320_v10, %v973_v5  ;;  %v3322_v15 = vpop.eup %3321 }
 0x380   :  { %v979_v16 = vsub.f32 1.0, %v3322_v15  ;;  %v981_v26 = vmul.f32 %v3322_v15, %v3892_v41 }
 0x381   :  { %v977_v12 = vadd.f32 %v976_v11, %v3807_v61 }
 0x383   :  { %3323 = vtanh.f32 %v977_v12 }
 0x38d   :  { %v3324_v22 = vpop.eup %3323 }
 0x38e   :  { %v980_v25 = vmul.f32 %v3324_v22, %v979_v16 }
 0x390   :  { %v982_v32 = vadd.f32 %v981_v26, %v980_v25  ;;  %v1167_v26 = vpop.permute.xlu1 %1166 }
 0x392   :  { %v990_v51 = vmul.f32 %v988_v33, %v982_v32  ;;  %v993_v53 = vsub.f32 %v982_v32, %v3892_v41 }
 0x394   :  { %992 = vst [vmem:[#allocation9 + $0x10] sm:$0xff] %v990_v51  ;;  %v994_v35 = vmul.f32 %v993_v53, %v988_v33 }
 0x396   :  { %v3938_v38 = vadd.f32 %v994_v35, %v3892_v41 }
 0x398   :  { %1065 = vmatmul.mubr.f32.vlgmr.msra.gmra.mrb[6].mxu0 %v3938_v38  ;;  %2505 = vmatmul.mubr.f32.vlgmr.msra.gmra.mrb[24].mxu1 %v3938_v38 }
 0x399   :  { %2965 = vmatpush1.bf16.msra.mxu0 %v3617_v17  ;;  %2996 = vmatpush3.bf16.msra.mxu1 %v3651_v45 }
 0x39a   :  { %2967 = vmatprep.subr.bf16.mxu0 %v3620_v18  ;;  %2997 = vmatprep.subr.bf16.mxu1 %v3513_v0 }
 0x39b   :  { %1243 = vmatprep.mubr.f32.mxu0 %v3514_v1  ;;  %2539 = vmatprep.mubr.msk.f32.mxu1 %vm3515_vm0, %v3514_v1 }
 0x39d   :  { %2969 = vmatpush1.bf16.msra.mxu0 %v3631_v28  ;;  %2999 = vmatpush3.bf16.msra.mxu1 %v3666_v55 }
 0x39e   :  { %2971 = vmatprep.subr.bf16.mxu0 %v3634_v29  ;;  %3000 = vmatprep.subr.bf16.mxu1 %v3513_v0 }
 0x3a1   :  { %2973 = vmatpush1.bf16.msra.mxu0 %v3645_v39  ;;  %3002 = vmatpush3.bf16.msra.mxu1 %v3682_v3 }
 0x3a2   :  { %2975 = vmatprep.subr.bf16.mxu0 %v3648_v40  ;;  %3003 = vmatprep.subr.bf16.mxu1 %v3513_v0 }
 0x3a5   :  { %2977 = vmatpush1.bf16.msra.mxu0 %v3658_v49  ;;  %3005 = vmatpush3.bf16.msra.mxu1 %v3698_v14 }
 0x3a6   :  { %2979 = vmatprep.subr.bf16.mxu0 %v3661_v50  ;;  %3006 = vmatprep.subr.bf16.mxu1 %v3513_v0 }
 0x3a9   :  { %2981 = vmatpush1.bf16.msra.mxu0 %v3674_v59  ;;  %3008 = vmatpush3.bf16.msra.mxu1 %v3714_v24 }
 0x3aa   :  { %2983 = vmatprep.subr.bf16.mxu0 %v3677_v60  ;;  %3009 = vmatprep.subr.bf16.mxu1 %v3513_v0 }
 0x3ad   :  { %2985 = vmatpush1.bf16.msra.mxu0 %v3690_v7  ;;  %3011 = vmatpush3.bf16.msra.mxu1 %v3728_v31 }
 0x3ae   :  { %2987 = vmatprep.subr.bf16.mxu0 %v3693_v8  ;;  %3012 = vmatprep.subr.bf16.mxu1 %v3513_v0 }
 0x3b1   :  { %2989 = vmatpush1.bf16.msra.mxu0 %v3706_v20  ;;  %3014 = vmatpush3.bf16.msra.mxu1 %v3742_v36 }
 0x3b2   :  { %2991 = vmatprep.subr.bf16.mxu0 %v3709_v21  ;;  %3015 = vmatprep.subr.bf16.mxu1 %v3513_v0 }
 0x3b5   :  { %2993 = vmatpush1.bf16.msra.mxu0 %v3722_v30  ;;  %3017 = vmatpush3.bf16.msra.mxu1 %v3753_v42 }
 0x3b6   :  { %3019 = vmatprep.subr.bf16.mxu0 %v3611_v9  ;;  %3050 = vmatprep.subr.bf16.mxu1 %v3513_v0 }
 0x46b   :  { %v1066_v61 = vpop.f32.mrb[6].mxu0  ;;  %v1151_v41 = vpop.f32.mrb[24].mxu1 }
 0x46c   :  { %v3248_v56 = vadd.f32 %v1066_v61, %v3815_v19  ;;  %v1068_v34 = vpop.f32.mrb[7].mxu0  ;;  %v2506_v43 = vpop.f32.mrb[25].mxu1  ;;  %v1152_v63 = vadd.f32 %v3830_v62, %v1151_v41 }
 0x46d   :  { %v3249_v47 = vadd.f32 %v1068_v34, %v3819_v27 }
 0x46e   :  { %v2112_v46 = vmul.f32 -1.442695, %v3248_v56 }
 0x46f   :  { %v2113_v52 = vmul.f32 -1.442695, %v3249_v47 }
 0x470   :  { %3325 = vpow2.f32 %v2112_v46 }
 0x471   :  { %3327 = vpow2.f32 %v2113_v52 }
 0x47a   :  { %v3326_v54 = vpop.eup %3325 }
 0x47b   :  { %v1079_v48 = vadd.f32 1.0, %v3326_v54  ;;  %v3328_v57 = vpop.eup %3327 }
 0x47c   :  { %v1080_v58 = vadd.f32 1.0, %v3328_v57 }
 0x47d   :  { %3329 = vrcp.f32 %v1079_v48 }
 0x47e   :  { %3331 = vrcp.f32 %v1080_v58 }
 0x487   :  { %v3330_v4 = vpop.eup %3329 }
 0x488   :  { %v1155_v5 = vmul.f32 %v3330_v4, %v1152_v63  ;;  %v3332_v11 = vpop.eup %3331 }
 0x489   :  { %v1158_v12 = vsub.f32 1.0, %v3332_v11  ;;  %v1160_v22 = vmul.f32 %v3332_v11, %v3938_v38 }
 0x48a   :  { %v1156_v10 = vadd.f32 %v1155_v5, %v3809_v2 }
 0x48c   :  { %3333 = vtanh.f32 %v1156_v10 }
 0x496   :  { %v3334_v15 = vpop.eup %3333 }
 0x497   :  { %v1159_v16 = vmul.f32 %v3334_v15, %v1158_v12 }
 0x499   :  { %v1161_v25 = vadd.f32 %v1160_v22, %v1159_v16  ;;  %v1346_v16 = vpop.permute.xlu0 %1345 }
 0x49b   :  { %v1169_v32 = vmul.f32 %v1167_v26, %v1161_v25  ;;  %v1172_v33 = vsub.f32 %v1161_v25, %v3938_v38 }
 0x49d   :  { %1171 = vst [vmem:[#allocation9 + $0x18] sm:$0xff] %v1169_v32  ;;  %v1173_v51 = vmul.f32 %v1172_v33, %v1167_v26 }
 0x49f   :  { %v3984_v53 = vadd.f32 %v1173_v51, %v3938_v38 }
 0x4a1   :  { %1244 = vmatmul.mubr.f32.vlgmr.msra.gmra.mrb[8].mxu0 %v3984_v53  ;;  %2540 = vmatmul.mubr.f32.vlgmr.msra.gmra.mrb[26].mxu1 %v3984_v53 }
 0x4a2   :  { %3021 = vmatpush1.bf16.msra.mxu0 %v3617_v17  ;;  %3052 = vmatpush3.bf16.msra.mxu1 %v3651_v45 }
 0x4a3   :  { %3023 = vmatprep.subr.bf16.mxu0 %v3620_v18  ;;  %3053 = vmatprep.subr.bf16.mxu1 %v3513_v0 }
 0x4a4   :  { %1422 = vmatprep.mubr.f32.mxu0 %v3514_v1  ;;  %2574 = vmatprep.mubr.msk.f32.mxu1 %vm3515_vm0, %v3514_v1 }
 0x4a6   :  { %3025 = vmatpush1.bf16.msra.mxu0 %v3631_v28  ;;  %3055 = vmatpush3.bf16.msra.mxu1 %v3666_v55 }
 0x4a7   :  { %3027 = vmatprep.subr.bf16.mxu0 %v3634_v29  ;;  %3056 = vmatprep.subr.bf16.mxu1 %v3513_v0 }
 0x4aa   :  { %3029 = vmatpush1.bf16.msra.mxu0 %v3645_v39  ;;  %3058 = vmatpush3.bf16.msra.mxu1 %v3682_v3 }
 0x4ab   :  { %3031 = vmatprep.subr.bf16.mxu0 %v3648_v40  ;;  %3059 = vmatprep.subr.bf16.mxu1 %v3513_v0 }
 0x4ae   :  { %3033 = vmatpush1.bf16.msra.mxu0 %v3658_v49  ;;  %3061 = vmatpush3.bf16.msra.mxu1 %v3698_v14 }
 0x4af   :  { %3035 = vmatprep.subr.bf16.mxu0 %v3661_v50  ;;  %3062 = vmatprep.subr.bf16.mxu1 %v3513_v0 }
 0x4b2   :  { %3037 = vmatpush1.bf16.msra.mxu0 %v3674_v59  ;;  %3064 = vmatpush3.bf16.msra.mxu1 %v3714_v24 }
 0x4b3   :  { %3039 = vmatprep.subr.bf16.mxu0 %v3677_v60  ;;  %3065 = vmatprep.subr.bf16.mxu1 %v3513_v0 }
 0x4b6   :  { %3041 = vmatpush1.bf16.msra.mxu0 %v3690_v7  ;;  %3067 = vmatpush3.bf16.msra.mxu1 %v3728_v31 }
 0x4b7   :  { %3043 = vmatprep.subr.bf16.mxu0 %v3693_v8  ;;  %3068 = vmatprep.subr.bf16.mxu1 %v3513_v0 }
 0x4ba   :  { %3045 = vmatpush1.bf16.msra.mxu0 %v3706_v20  ;;  %3070 = vmatpush3.bf16.msra.mxu1 %v3742_v36 }
 0x4bb   :  { %3047 = vmatprep.subr.bf16.mxu0 %v3709_v21  ;;  %3071 = vmatprep.subr.bf16.mxu1 %v3513_v0 }
 0x4be   :  { %3049 = vmatpush1.bf16.msra.mxu0 %v3722_v30  ;;  %3073 = vmatpush3.bf16.msra.mxu1 %v3753_v42 }
 0x4bf   :  { %3075 = vmatprep.subr.bf16.mxu0 %v3611_v9  ;;  %3106 = vmatprep.subr.bf16.mxu1 %v3513_v0 }
 0x574   :  { %v1245_v2 = vpop.f32.mrb[8].mxu0  ;;  %v1330_v35 = vpop.f32.mrb[26].mxu1 }
 0x575   :  { %v3250_v38 = vadd.f32 %v1245_v2, %v3815_v19  ;;  %v1247_v61 = vpop.f32.mrb[9].mxu0  ;;  %v2541_v41 = vpop.f32.mrb[27].mxu1  ;;  %v1331_v48 = vadd.f32 %v3830_v62, %v1330_v35 }
 0x576   :  { %v3251_v34 = vadd.f32 %v1247_v61, %v3819_v27 }
 0x577   :  { %v2115_v56 = vmul.f32 -1.442695, %v3250_v38 }
 0x578   :  { %v2116_v43 = vmul.f32 -1.442695, %v3251_v34 }
 0x579   :  { %3335 = vpow2.f32 %v2115_v56 }
 0x57a   :  { %3337 = vpow2.f32 %v2116_v43 }
 0x583   :  { %v3336_v46 = vpop.eup %3335 }
 0x584   :  { %v1258_v47 = vadd.f32 1.0, %v3336_v46  ;;  %v3338_v52 = vpop.eup %3337 }
 0x585   :  { %v1259_v54 = vadd.f32 1.0, %v3338_v52 }
 0x586   :  { %3339 = vrcp.f32 %v1258_v47 }
 0x587   :  { %3341 = vrcp.f32 %v1259_v54 }
 0x590   :  { %v3340_v57 = vpop.eup %3339 }
 0x591   :  { %v1334_v58 = vmul.f32 %v3340_v57, %v1331_v48  ;;  %v3342_v4 = vpop.eup %3341 }
 0x592   :  { %v1337_v5 = vsub.f32 1.0, %v3342_v4  ;;  %v1339_v12 = vmul.f32 %v3342_v4, %v3984_v53 }
 0x593   :  { %v1335_v63 = vadd.f32 %v1334_v58, %v3811_v6 }
 0x595   :  { %3343 = vtanh.f32 %v1335_v63 }
 0x59f   :  { %v3344_v10 = vpop.eup %3343 }
 0x5a0   :  { %v1338_v11 = vmul.f32 %v3344_v10, %v1337_v5  ;;  %v1525_v10 = vpop.permute.xlu1 %1524 }
 0x5a2   :  { %v1340_v15 = vadd.f32 %v1339_v12, %v1338_v11 }
 0x5a4   :  { %v1348_v22 = vmul.f32 %v1346_v16, %v1340_v15  ;;  %v1351_v25 = vsub.f32 %v1340_v15, %v3984_v53 }
 0x5a6   :  { %1350 = vst [vmem:[#allocation9 + $0x20] sm:$0xff] %v1348_v22  ;;  %v1352_v26 = vmul.f32 %v1351_v25, %v1346_v16 }
 0x5a8   :  { %v4030_v32 = vadd.f32 %v1352_v26, %v3984_v53 }
 0x5aa   :  { %1423 = vmatmul.mubr.f32.vlgmr.msra.gmra.mrb[10].mxu0 %v4030_v32  ;;  %2575 = vmatmul.mubr.f32.vlgmr.msra.gmra.mrb[28].mxu1 %v4030_v32 }
 0x5ab   :  { %3077 = vmatpush1.bf16.msra.mxu0 %v3617_v17  ;;  %3108 = vmatpush3.bf16.msra.mxu1 %v3651_v45 }
 0x5ac   :  { %3079 = vmatprep.subr.bf16.mxu0 %v3620_v18  ;;  %3109 = vmatprep.subr.bf16.mxu1 %v3513_v0 }
 0x5ad   :  { %1601 = vmatprep.mubr.f32.mxu0 %v3514_v1  ;;  %2609 = vmatprep.mubr.msk.f32.mxu1 %vm3515_vm0, %v3514_v1 }
 0x5af   :  { %3081 = vmatpush1.bf16.msra.mxu0 %v3631_v28  ;;  %3111 = vmatpush3.bf16.msra.mxu1 %v3666_v55 }
 0x5b0   :  { %3083 = vmatprep.subr.bf16.mxu0 %v3634_v29  ;;  %3112 = vmatprep.subr.bf16.mxu1 %v3513_v0 }
 0x5b3   :  { %3085 = vmatpush1.bf16.msra.mxu0 %v3645_v39  ;;  %3114 = vmatpush3.bf16.msra.mxu1 %v3682_v3 }
 0x5b4   :  { %3087 = vmatprep.subr.bf16.mxu0 %v3648_v40  ;;  %3115 = vmatprep.subr.bf16.mxu1 %v3513_v0 }
 0x5b7   :  { %3089 = vmatpush1.bf16.msra.mxu0 %v3658_v49  ;;  %3117 = vmatpush3.bf16.msra.mxu1 %v3698_v14 }
 0x5b8   :  { %3091 = vmatprep.subr.bf16.mxu0 %v3661_v50  ;;  %3118 = vmatprep.subr.bf16.mxu1 %v3513_v0 }
 0x5bb   :  { %3093 = vmatpush1.bf16.msra.mxu0 %v3674_v59  ;;  %3120 = vmatpush3.bf16.msra.mxu1 %v3714_v24 }
 0x5bc   :  { %3095 = vmatprep.subr.bf16.mxu0 %v3677_v60  ;;  %3121 = vmatprep.subr.bf16.mxu1 %v3513_v0 }
 0x5bf   :  { %3097 = vmatpush1.bf16.msra.mxu0 %v3690_v7  ;;  %3123 = vmatpush3.bf16.msra.mxu1 %v3728_v31 }
 0x5c0   :  { %3099 = vmatprep.subr.bf16.mxu0 %v3693_v8  ;;  %3124 = vmatprep.subr.bf16.mxu1 %v3513_v0 }
 0x5c3   :  { %3101 = vmatpush1.bf16.msra.mxu0 %v3706_v20  ;;  %3126 = vmatpush3.bf16.msra.mxu1 %v3742_v36 }
 0x5c4   :  { %3103 = vmatprep.subr.bf16.mxu0 %v3709_v21  ;;  %3127 = vmatprep.subr.bf16.mxu1 %v3513_v0 }
 0x5c7   :  { %3105 = vmatpush1.bf16.msra.mxu0 %v3722_v30  ;;  %3129 = vmatpush3.bf16.msra.mxu1 %v3753_v42 }
 0x5c8   :  { %3131 = vmatprep.subr.bf16.mxu0 %v3611_v9  ;;  %3162 = vmatprep.subr.bf16.mxu1 %v3513_v0 }
 0x67d   :  { %v1424_v6 = vpop.f32.mrb[10].mxu0  ;;  %v1509_v33 = vpop.f32.mrb[28].mxu1 }
 0x67e   :  { %v3252_v51 = vadd.f32 %v1424_v6, %v3815_v19  ;;  %v1426_v53 = vpop.f32.mrb[11].mxu0  ;;  %v2576_v2 = vpop.f32.mrb[29].mxu1  ;;  %v1510_v46 = vadd.f32 %v3830_v62, %v1509_v33 }
 0x67f   :  { %v3253_v38 = vadd.f32 %v1426_v53, %v3819_v27 }
 0x680   :  { %v2118_v35 = vmul.f32 -1.442695, %v3252_v51 }
 0x681   :  { %v2119_v61 = vmul.f32 -1.442695, %v3253_v38 }
 0x682   :  { %3345 = vpow2.f32 %v2118_v35 }
 0x683   :  { %3347 = vpow2.f32 %v2119_v61 }
 0x68c   :  { %v3346_v41 = vpop.eup %3345 }
 0x68d   :  { %v1437_v56 = vadd.f32 1.0, %v3346_v41  ;;  %v3348_v34 = vpop.eup %3347 }
 0x68e   :  { %v1438_v43 = vadd.f32 1.0, %v3348_v34 }
 0x68f   :  { %3349 = vrcp.f32 %v1437_v56 }
 0x690   :  { %3351 = vrcp.f32 %v1438_v43 }
 0x699   :  { %v3350_v47 = vpop.eup %3349 }
 0x69a   :  { %v1513_v52 = vmul.f32 %v3350_v47, %v1510_v46  ;;  %v3352_v48 = vpop.eup %3351 }
 0x69b   :  { %v1516_v57 = vsub.f32 1.0, %v3352_v48  ;;  %v1518_v4 = vmul.f32 %v3352_v48, %v4030_v32  ;;  %v1704_v48 = vpop.permute.xlu0 %1703 }
 0x69c   :  { %v1514_v54 = vadd.f32 %v1513_v52, %v3813_v13 }
 0x69e   :  { %3353 = vtanh.f32 %v1514_v54 }
 0x6a8   :  { %v3354_v58 = vpop.eup %3353 }
 0x6a9   :  { %v1517_v63 = vmul.f32 %v3354_v58, %v1516_v57 }
 0x6ab   :  { %v1519_v5 = vadd.f32 %v1518_v4, %v1517_v63 }
 0x6ad   :  { %v1527_v11 = vmul.f32 %v1525_v10, %v1519_v5  ;;  %v1530_v12 = vsub.f32 %v1519_v5, %v4030_v32 }
 0x6af   :  { %1529 = vst [vmem:[#allocation9 + $0x28] sm:$0xff] %v1527_v11  ;;  %v1531_v15 = vmul.f32 %v1530_v12, %v1525_v10 }
 0x6b1   :  { %v4076_v16 = vadd.f32 %v1531_v15, %v4030_v32 }
 0x6b3   :  { %1602 = vmatmul.mubr.f32.vlgmr.msra.gmra.mrb[12].mxu0 %v4076_v16  ;;  %2610 = vmatmul.mubr.f32.vlgmr.msra.gmra.mrb[30].mxu1 %v4076_v16 }
 0x6b4   :  { %3133 = vmatpush1.bf16.msra.mxu0 %v3617_v17  ;;  %3164 = vmatpush3.bf16.msra.mxu1 %v3651_v45 }
 0x6b5   :  { %3135 = vmatprep.subr.bf16.mxu0 %v3620_v18  ;;  %3165 = vmatprep.subr.bf16.mxu1 %v3513_v0 }
 0x6b6   :  { %1780 = vmatprep.mubr.f32.mxu0 %v3514_v1  ;;  %2644 = vmatprep.mubr.msk.f32.mxu1 %vm3515_vm0, %v3514_v1 }
 0x6b8   :  { %3137 = vmatpush1.bf16.msra.mxu0 %v3631_v28  ;;  %3167 = vmatpush3.bf16.msra.mxu1 %v3666_v55 }
 0x6b9   :  { %3139 = vmatprep.subr.bf16.mxu0 %v3634_v29  ;;  %3168 = vmatprep.subr.bf16.mxu1 %v3513_v0 }
 0x6bc   :  { %3141 = vmatpush1.bf16.msra.mxu0 %v3645_v39  ;;  %3170 = vmatpush3.bf16.msra.mxu1 %v3682_v3 }
 0x6bd   :  { %3143 = vmatprep.subr.bf16.mxu0 %v3648_v40  ;;  %3171 = vmatprep.subr.bf16.mxu1 %v3513_v0 }
 0x6c0   :  { %3145 = vmatpush1.bf16.msra.mxu0 %v3658_v49  ;;  %3173 = vmatpush3.bf16.msra.mxu1 %v3698_v14 }
 0x6c1   :  { %3147 = vmatprep.subr.bf16.mxu0 %v3661_v50  ;;  %3174 = vmatprep.subr.bf16.mxu1 %v3513_v0 }
 0x6c4   :  { %3149 = vmatpush1.bf16.msra.mxu0 %v3674_v59  ;;  %3176 = vmatpush3.bf16.msra.mxu1 %v3714_v24 }
 0x6c5   :  { %3151 = vmatprep.subr.bf16.mxu0 %v3677_v60  ;;  %3177 = vmatprep.subr.bf16.mxu1 %v3513_v0 }
 0x6c8   :  { %3153 = vmatpush1.bf16.msra.mxu0 %v3690_v7  ;;  %3179 = vmatpush3.bf16.msra.mxu1 %v3728_v31 }
 0x6c9   :  { %3155 = vmatprep.subr.bf16.mxu0 %v3693_v8  ;;  %3180 = vmatprep.subr.bf16.mxu1 %v3513_v0 }
 0x6cc   :  { %3157 = vmatpush1.bf16.msra.mxu0 %v3706_v20  ;;  %3182 = vmatpush3.bf16.msra.mxu1 %v3742_v36 }
 0x6cd   :  { %3159 = vmatprep.subr.bf16.mxu0 %v3709_v21  ;;  %3183 = vmatprep.subr.bf16.mxu1 %v3513_v0 }
 0x6d0   :  { %3161 = vmatpush1.bf16.msra.mxu0 %v3722_v30  ;;  %3185 = vmatpush3.bf16.msra.mxu1 %v3753_v42 }
 0x6d1   :  { %3187 = vmatprep.subr.bf16.mxu0 %v3611_v9  ;;  %3218 = vmatprep.subr.bf16.mxu1 %v3513_v0 }
 0x786   :  { %v1603_v13 = vpop.f32.mrb[12].mxu0  ;;  %v1688_v22 = vpop.f32.mrb[30].mxu1 }
 0x787   :  { %v3254_v25 = vadd.f32 %v1603_v13, %v3815_v19  ;;  %v1605_v26 = vpop.f32.mrb[13].mxu0  ;;  %v2611_v32 = vpop.f32.mrb[31].mxu1  ;;  %v1689_v9 = vadd.f32 %v3830_v62, %v1688_v22 }
 0x788   :  { %v3255_v33 = vadd.f32 %v1605_v26, %v3819_v27 }
 0x789   :  { %v2121_v6 = vmul.f32 -1.442695, %v3254_v25 }
 0x78a   :  { %v2122_v51 = vmul.f32 -1.442695, %v3255_v33 }
 0x78b   :  { %3355 = vpow2.f32 %v2121_v6  ;;  %v3385_v6 = vld [vmem:[%s4205_s6] ss:$0 sm:$0xff]  ;;  %s3518_s6 = smov [#allocation10]  }
 0x78c   :  { %3357 = vpow2.f32 %v2122_v51  ;;  %s2089_s17 = sshll.u32 %s3518_s6, 4  ;;  %s2090_s17 = int_to_ptr.vmem [resolvable:$true] %s2089_s17 }
 0x795   :  { %v3356_v53 = vpop.eup %3355 }
 0x796   :  { %v1616_v2 = vadd.f32 1.0, %v3356_v53  ;;  %v3358_v35 = vpop.eup %3357 }
 0x797   :  { %v1617_v38 = vadd.f32 1.0, %v3358_v35 }
 0x798   :  { %3359 = vrcp.f32 %v1616_v2 }
 0x799   :  { %3361 = vrcp.f32 %v1617_v38 }
 0x7a2   :  { %v3360_v61 = vpop.eup %3359 }
 0x7a3   :  { %v1692_v41 = vmul.f32 %v3360_v61, %v1689_v9  ;;  %v3362_v34 = vpop.eup %3361 }
 0x7a4   :  { %v1695_v43 = vsub.f32 1.0, %v3362_v34  ;;  %v1697_v52 = vmul.f32 %v3362_v34, %v4076_v16 }
 0x7a5   :  { %v1693_v56 = vadd.f32 %v1692_v41, %v3817_v23  ;;  %v2062_v41 = vpop.permute.xlu0 %2061 }
 0x7a7   :  { %3363 = vtanh.f32 %v1693_v56 }
 0x7b1   :  { %v3364_v46 = vpop.eup %3363 }
 0x7b2   :  { %v1696_v47 = vmul.f32 %v3364_v46, %v1695_v43 }
 0x7b4   :  { %v1698_v54 = vadd.f32 %v1697_v52, %v1696_v47 }
 0x7b6   :  { %v1706_v57 = vmul.f32 %v1704_v48, %v1698_v54  ;;  %v1709_v58 = vsub.f32 %v1698_v54, %v4076_v16 }
 0x7b8   :  { %1708 = vst [vmem:[#allocation9 + $0x30] sm:$0xff] %v1706_v57  ;;  %v1710_v63 = vmul.f32 %v1709_v58, %v1704_v48 }
 0x7ba   :  { %v4122_v4 = vadd.f32 %v1710_v63, %v4076_v16 }
 0x7bc   :  { %1781 = vmatmul.mubr.f32.vlgmr.msra.gmra.mrb[14].mxu0 %v4122_v4  ;;  %2645 = vmatmul.mubr.f32.vlgmr.msra.gmra.mrb[32].mxu1 %v4122_v4 }
 0x7bd   :  { %3189 = vmatpush1.bf16.msra.mxu0 %v3617_v17  ;;  %3220 = vmatpush3.bf16.msra.mxu1 %v3651_v45 }
 0x7be   :  { %3191 = vmatprep.subr.bf16.mxu0 %v3620_v18  ;;  %3221 = vmatprep.subr.bf16.mxu1 %v3513_v0 }
 0x7bf   :  { %1959 = vmatprep.mubr.f32.mxu0 %v3514_v1  ;;  %2679 = vmatprep.mubr.msk.f32.mxu1 %vm3515_vm0, %v3514_v1 }
 0x7c1   :  { %3193 = vmatpush1.bf16.msra.mxu0 %v3631_v28  ;;  %3223 = vmatpush3.bf16.msra.mxu1 %v3666_v55 }
 0x7c2   :  { %3195 = vmatprep.subr.bf16.mxu0 %v3634_v29  ;;  %3224 = vmatprep.subr.bf16.mxu1 %v3513_v0 }
 0x7c5   :  { %3197 = vmatpush1.bf16.msra.mxu0 %v3645_v39  ;;  %3226 = vmatpush3.bf16.msra.mxu1 %v3682_v3 }
 0x7c6   :  { %3199 = vmatprep.subr.bf16.mxu0 %v3648_v40  ;;  %3227 = vmatprep.subr.bf16.mxu1 %v3513_v0 }
 0x7c9   :  { %3201 = vmatpush1.bf16.msra.mxu0 %v3658_v49  ;;  %3229 = vmatpush3.bf16.msra.mxu1 %v3698_v14 }
 0x7ca   :  { %3203 = vmatprep.subr.bf16.mxu0 %v3661_v50  ;;  %3230 = vmatprep.subr.bf16.mxu1 %v3513_v0 }
 0x7cd   :  { %3205 = vmatpush1.bf16.msra.mxu0 %v3674_v59  ;;  %3232 = vmatpush3.bf16.msra.mxu1 %v3714_v24 }
 0x7ce   :  { %3207 = vmatprep.subr.bf16.mxu0 %v3677_v60  ;;  %3233 = vmatprep.subr.bf16.mxu1 %v3513_v0 }
 0x7d1   :  { %3209 = vmatpush1.bf16.msra.mxu0 %v3690_v7  ;;  %3235 = vmatpush3.bf16.msra.mxu1 %v3728_v31  ;;  %v1883_v31 = vpop.permute.xlu1 %1882 }
 0x7d2   :  { %3211 = vmatprep.subr.bf16.mxu0 %v3693_v8  ;;  %3236 = vmatprep.subr.bf16.mxu1 %v3513_v0 }
 0x7d5   :  { %3213 = vmatpush1.bf16.msra.mxu0 %v3706_v20  ;;  %3238 = vmatpush3.bf16.msra.mxu1 %v3742_v36 }
 0x7d6   :  { %3215 = vmatprep.subr.bf16.mxu0 %v3709_v21  ;;  %3239 = vmatprep.subr.bf16.mxu1 %v3513_v0 }
 0x7d9   :  { %3217 = vmatpush1.bf16.msra.mxu0 %v3722_v30  ;;  %3241 = vmatpush3.bf16.msra.mxu1 %v3753_v42 }
 0x88f   :  { %v1782_v1 = vpop.f32.mrb[14].mxu0  ;;  %v1867_v17 = vpop.f32.mrb[32].mxu1 }
 0x890   :  { %v3256_v18 = vadd.f32 %v1782_v1, %v3815_v19  ;;  %v1784_v28 = vpop.f32.mrb[15].mxu0  ;;  %v2646_v29 = vpop.f32.mrb[33].mxu1  ;;  %v1868_v59 = vadd.f32 %v3830_v62, %v1867_v17 }
 0x891   :  { %v3257_v40 = vadd.f32 %v1784_v28, %v3819_v27 }
 0x892   :  { %v2124_v39 = vmul.f32 -1.442695, %v3256_v18 }
 0x893   :  { %v2125_v45 = vmul.f32 -1.442695, %v3257_v40 }
 0x894   :  { %3365 = vpow2.f32 %v2124_v39 }
 0x895   :  { %3367 = vpow2.f32 %v2125_v45 }
 0x89e   :  { %v3366_v49 = vpop.eup %3365 }
 0x89f   :  { %v1795_v50 = vadd.f32 1.0, %v3366_v49  ;;  %v3368_v0 = vpop.eup %3367 }
 0x8a0   :  { %v1796_v55 = vadd.f32 1.0, %v3368_v0 }
 0x8a1   :  { %3369 = vrcp.f32 %v1795_v50 }
 0x8a2   :  { %3371 = vrcp.f32 %v1796_v55 }
 0x8ab   :  { %v3370_v60 = vpop.eup %3369 }
 0x8ac   :  { %v1871_v3 = vmul.f32 %v3370_v60, %v1868_v59  ;;  %v3372_v8 = vpop.eup %3371 }
 0x8ad   :  { %v1874_v14 = vsub.f32 1.0, %v3372_v8  ;;  %v1876_v24 = vmul.f32 %v3372_v8, %v4122_v4 }
 0x8ae   :  { %v1872_v7 = vadd.f32 %v1871_v3, %v3822_v37 }
 0x8b0   :  { %3373 = vtanh.f32 %v1872_v7 }
 0x8ba   :  { %v3374_v20 = vpop.eup %3373 }
 0x8bb   :  { %v1875_v21 = vmul.f32 %v3374_v20, %v1874_v14 }
 0x8bd   :  { %v1877_v30 = vadd.f32 %v1876_v24, %v1875_v21 }
 0x8bf   :  { %v1885_v36 = vmul.f32 %v1883_v31, %v1877_v30  ;;  %v1888_v42 = vsub.f32 %v1877_v30, %v4122_v4 }
 0x8c1   :  { %1887 = vst [vmem:[#allocation9 + $0x38] sm:$0xff] %v1885_v36  ;;  %v1889_v23 = vmul.f32 %v1888_v42, %v1883_v31 }
 0x8c3   :  { %v1890_v62 = vadd.f32 %v1889_v23, %v4122_v4 }
 0x8c5   :  { %1960 = vmatmul.mubr.f32.vlgmr.msra.gmra.mrb[16].mxu0 %v1890_v62  ;;  %2680 = vmatmul.mubr.f32.vlgmr.msra.gmra.mrb[34].mxu1 %v1890_v62 }
 0x998   :  { %v1961_v5 = vpop.f32.mrb[16].mxu0  ;;  %v2046_v37 = vpop.f32.mrb[34].mxu1 }
 0x999   :  { %v3258_v10 = vadd.f32 %v1961_v5, %v3815_v19  ;;  %v1963_v11 = vpop.f32.mrb[17].mxu0  ;;  %v2681_v12 = vpop.f32.mrb[35].mxu1  ;;  %v2047_v33 = vadd.f32 %v3385_v6, %v2046_v37 }
 0x99a   :  { %v3259_v16 = vadd.f32 %v1963_v11, %v3819_v27 }
 0x99b   :  { %v2127_v15 = vmul.f32 -1.442695, %v3258_v10 }
 0x99c   :  { %v2128_v13 = vmul.f32 -1.442695, %v3259_v16 }
 0x99d   :  { %3375 = vpow2.f32 %v2127_v15 }
 0x99e   :  { %3377 = vpow2.f32 %v2128_v13 }
 0x9a7   :  { %v3376_v22 = vpop.eup %3375 }
 0x9a8   :  { %v1974_v25 = vadd.f32 1.0, %v3376_v22  ;;  %v3378_v26 = vpop.eup %3377 }
 0x9a9   :  { %v1975_v32 = vadd.f32 1.0, %v3378_v26 }
 0x9aa   :  { %3379 = vrcp.f32 %v1974_v25 }
 0x9ab   :  { %3381 = vrcp.f32 %v1975_v32 }
 0x9b4   :  { %v3380_v51 = vpop.eup %3379 }
 0x9b5   :  { %v2050_v19 = vmul.f32 %v3380_v51, %v2047_v33  ;;  %v3382_v27 = vpop.eup %3381 }
 0x9b6   :  { %v2053_v2 = vsub.f32 1.0, %v3382_v27  ;;  %v2055_v9 = vmul.f32 %v3382_v27, %v1890_v62 }
 0x9b7   :  { %v2051_v53 = vadd.f32 %v2050_v19, %v3825_v44 }
 0x9b9   :  { %3383 = vtanh.f32 %v2051_v53 }
 0x9c3   :  { %v3384_v35 = vpop.eup %3383 }
 0x9c4   :  { %v2054_v38 = vmul.f32 %v3384_v35, %v2053_v2 }
 0x9c6   :  { %v2056_v61 = vadd.f32 %v2055_v9, %v2054_v38 }
 0x9c8   :  { %v2064_v56 = vmul.f32 %v2062_v41, %v2056_v61  ;;  %v2067_v34 = vsub.f32 %v2056_v61, %v1890_v62 }
 0x9ca   :  { %2066 = vst [vmem:[#allocation9 + $0x40] sm:$0xff] %v2064_v56  ;;  %v2068_v43 = vmul.f32 %v2067_v34, %v2062_v41 }
 0x9cb   :  { %3463 = shalt.err (!%p3460_p0)
}
 0x9cc   :  { %s3464_s22 = scalar_lea.hbm %s4206_s7, 1152 }
 0x9cd   :  { %p3465_p1 = scmp.ne.s32.totalorder %s4206_s7, %s3464_s22  ;;  %p3468_p2 = scmp.lt.u32.totalorder %s3464_s22, %s4206_s7 }
 0x9cf   :  { %p3470_p3 = pnand %p3468_p2, %p3465_p1 }
 0x9d1   :  { %3473 = shalt.err (!%p3470_p3)
}
 0x9d2   :  { %2082 = dma.vmem_to_hbm [thread:$0]  %s2077_s16, 1152, %s4206_s7, [#allocation5], %s3511_s2, %s3511_s2, %s3512_s20   ;;  %v2069_v44 = vadd.f32 %v2068_v43, %v1890_v62 }
 0x9d3   :  { %s3474_s27 = scalar_lea.vmem %s2090_s17, 128  ;;  %p3479_p5 = scmp.lt.s32.totalorder %s2090_s17, %s2090_s17 }
 0x9d4   :  { %2070 = vst [vmem:[#allocation10] sm:$0xff] %v2069_v44  ;;  %p3475_p4 = scmp.ne.s32.totalorder %s2090_s17, %s3474_s27  ;;  %p3480_p6 = scmp.lt.s32.totalorder %s3474_s27, %s3474_s27 }
 0x9d6   :  { %p3481_p7 = por %p3480_p6, %p3479_p5 }
 0x9d8   :  { %p3482_p8 = pnand %p3481_p7, %p3475_p4 }
 0x9da   :  { %3485 = shalt.err (!%p3482_p8)
}
 0x9db   :  { %s3486_s4 = scalar_lea.hbm %s4207_s8, 128 }
 0x9dc   :  { %p3487_p9 = scmp.ne.s32.totalorder %s4207_s8, %s3486_s4  ;;  %p3490_p10 = scmp.lt.u32.totalorder %s3486_s4, %s4207_s8 }
 0x9de   :  { %p3492_p11 = pnand %p3490_p10, %p3487_p9 }
 0x9e0   :  { %3495 = shalt.err (!%p3492_p11)
}
 0x9e1   :  { %2092 = dma.vmem_to_hbm [thread:$0]  %s2090_s17, 128, %s4207_s8, [#allocation11]  }
 0x9e2   :  { %3500 = dma.done.wait [#allocation5], 1152  }
 0x9e3   :  { %3501 = vsyncadd [#allocation5], 4294966144 }
 0x9e4   :  { %3502 = dma.done.wait [#allocation11], 128  }
 0x9e5   :  { %3503 = vsyncadd [#allocation11], 4294967168 }
 0x9e6   :  { %2099 = vsyncpa [#allocation4], 1 }
 0x9e7   :  { %2100 = vsyncpa [#allocation7], 1 }
 0x9e8   :  { %2101 = vsyncpa [#allocation5], 1 }
 0x9e9   :  { %2102 = vsyncpa [#allocation11], 1 }

</bundles_post_ra>
